<compile_context>
chip_gen: v5e
topology: v5e:2x2
jax: 0.10.0
libtpu: 0.0.40
codegen_flags: <defaults>
</compile_context>

<pallas_src>
from functools import partial

import jax
import jax.numpy as jnp
from jax.experimental import pallas as pl
from jax.experimental.pallas import tpu as pltpu

TIMEDIM = 33


def _rup(x, m):
    return ((x + m - 1) // m) * m


def _pad_to(x, shape):
    return jnp.pad(x, [(0, t - s) for s, t in zip(x.shape, shape)])


# ----------------------------------------------------------------------------
# Fused Pallas kernel: LSTM + id2 gather + all dense heads
# ----------------------------------------------------------------------------
def ed_fused_kernel(lens_ref,                        # SMEM (B,) int32 seq lengths
                    x_ref,                           # (S*Bp, Ep) bf16, time-major text embeds
                    wih_ref, whh_ref, bl_ref,        # (Ep,4Hp) bf16, (Hp,4Hp) bf16, (1,4Hp) f32
                    encin_ref, wenc_ref, benc_ref,   # (Bp,EncInP), (EncInP,EncP), (1,EncP)
                    wuser_ref, buser_ref,            # (EncP,6), (1,6)   [mlpuser|mlpuser2]
                    tt_ref, wtl_ref, wtt_ref, bt_ref,  # (B,38), (Hp,9), (38,9), (1,9)
                    out_ref,                         # (B,3)
                    gates_sc, y_sc, lo_sc,           # VMEM (S*Bp,4Hp), (S,Bp,Hp), (Bp,Hp)
                    *, B, S, Bp, Hp):
    f32 = jnp.float32
    bf16 = jnp.bfloat16

    # ---- Everything LSTM-independent goes first so the LLO scheduler can hide
    #      it under the big hoisted projection's MXU latency.

    # LSTM input->hidden projection for ALL timesteps in one MXU matmul.
    # Gate (lane) order is [i | f | o | g].
    gates_sc[...] = (jnp.dot(x_ref[...], wih_ref[...], preferred_element_type=f32)
                     + bl_ref[...])                                  # (S*Bp, 4Hp) f32

    # enc_mlp + fused mlpuser/mlpuser2 (Dropout = identity, then ReLU)
    enc = jnp.maximum(
        jnp.dot(encin_ref[...], wenc_ref[...], preferred_element_type=f32)
        + benc_ref[...], 0.0)                                        # (Bp, EncP)
    uo = jnp.maximum(
        jnp.dot(enc, wuser_ref[...], preferred_element_type=f32)
        + buser_ref[...], 0.0)                                       # (Bp, 6)
    user_out = uo[:B, 0:3]
    user_out2 = uo[:B, 3:6]

    # [time | textnum] contribution of the text head (time Linear pre-folded).
    text_partial = (jnp.dot(tt_ref[...], wtt_ref[...], preferred_element_type=f32)
                    + bt_ref[...])                                   # (B, 9)

    w_hh = whh_ref[...]                                              # bf16, stays resident

    # ---- Serial LSTM recurrence: one (Bp,Hp)x(Hp,4Hp) MXU matmul + one sigmoid
    #      slab + one tanh per step on the critical path.
    def step(t, carry):
        h, c = carry
        base = pl.multiple_of(t * Bp, Bp)                            # aligned sublane start
        g = (gates_sc[pl.ds(base, Bp), :]
             + jnp.dot(h.astype(bf16), w_hh, preferred_element_type=f32))  # (Bp, 4Hp) f32
        sig = jax.nn.sigmoid(g[:, 0:3 * Hp])                         # [i|f|o] in one launch
        i_g = sig[:, 0 * Hp:1 * Hp]
        f_g = sig[:, 1 * Hp:2 * Hp]
        o_g = sig[:, 2 * Hp:3 * Hp]
        g_g = jnp.tanh(g[:, 3 * Hp:4 * Hp])
        c_new = f_g * c + i_g * g_g
        h_new = o_g * jnp.tanh(c_new)
        y_sc[t] = h_new             # unmasked; pad_packed masking applied at gather
        return (h_new, c_new)

    h0 = jnp.zeros((Bp, Hp), f32)
    c0 = jnp.zeros((Bp, Hp), f32)
    jax.lax.fori_loop(0, S, step, (h0, c0), unroll=True)

    # ---- in-kernel gather of the id2 rows from the LSTM output.
    #      id2[i] = len[i] + i*S into the flattened (B*S, H) view:
    #        len[i] <  S -> (batch i,   time len[i])   (zero-filled region)
    #        len[i] == S -> (batch i+1, time 0), clamped to the last row when it
    #                       runs off the end (matches jnp.take's clamping).
    lo_sc[...] = jnp.zeros_like(lo_sc)
    for i in range(B):                                   # B is small & static
        li = lens_ref[i]
        full = li >= S
        b_sel = jnp.where(full, i + 1, i)
        t_sel = jnp.where(full, 0, li)
        oob = b_sel >= B
        b_sel = jnp.where(oob, B - 1, b_sel)
        t_sel = jnp.where(oob, S - 1, t_sel)
        len_b = lens_ref[b_sel]                          # dynamic SMEM read
        # pick sublane b_sel out of the (Bp, Hp) tile at time t_sel
        tile = y_sc[t_sel]                                           # (Bp, Hp)
        sel = jax.lax.broadcasted_iota(jnp.int32, (Bp, 1), 0) == b_sel
        row = jnp.sum(jnp.where(sel, tile, 0.0), axis=0, keepdims=True)  # (1, Hp)
        # pad_packed_sequence zero-fills outputs at t >= len[b]
        row = jnp.where(len_b > t_sel, row, jnp.zeros_like(row))
        lo_sc[pl.ds(i, 1), :] = row

    # ---- text head: lstm_out @ W  +  precomputed [time|textnum] partial
    text_out = jax.nn.sigmoid(
        jnp.dot(lo_sc[...], wtl_ref[...], preferred_element_type=f32)[:B]
        + text_partial)                                              # (B, 9)

    # text_out.view(B,3,3) * user_out[:,None,:], summed over dim 1, /3, + user_out2
    s = (text_out[:, 0:3] + text_out[:, 3:6] + text_out[:, 6:9]) * user_out / 3.0
    out_ref[...] = user_out2 + s


# ----------------------------------------------------------------------------
# Parameter initialization (deterministic, synthetic, "natural" layout)
# ----------------------------------------------------------------------------
def init_params(key, len_userdic, len_textdic, hidden_dim2=50, enc_dim=50,
                user_embedding_dim=60, text_embedding_dim=60,
                time_embedding_dim=8):
    ks = jax.random.split(key, 20)
    s = 0.1

    def rnd(k, shape):
        return s * jax.random.normal(k, shape, dtype=jnp.float32)

    E = text_embedding_dim
    H = hidden_dim2
    params = {
        # embeddings (padding_idx=0 -> zero row)
        'user_emb': rnd(ks[0], (len_userdic, user_embedding_dim)).at[0].set(0.0),
        'text_emb': rnd(ks[1], (len_textdic, E)).at[0].set(0.0),
        # time Linear(33, 8, bias=False)
        'w_time': rnd(ks[2], (TIMEDIM, time_embedding_dim)),
        # enc_mlp Linear(60+17, enc_dim) split by input block
        'w_enc_u': rnd(ks[3], (user_embedding_dim, enc_dim)),
        'w_enc_n': rnd(ks[4], (17, enc_dim)),
        'b_enc': rnd(ks[5], (1, enc_dim)),
        # LSTM(input=60, hidden=50), gate order i,f,g,o; b = b_ih + b_hh
        'lstm_wih': rnd(ks[6], (4, E, H)),
        'lstm_whh': rnd(ks[7], (4, H, H)),
        'lstm_b': rnd(ks[8], (4, 1, H)),
        # mlpuser / mlpuser2 Linear(enc_dim, 3)
        'w_u': rnd(ks[9], (enc_dim, 3)),
        'b_u': rnd(ks[10], (1, 3)),
        'w_u2': rnd(ks[11], (enc_dim, 3)),
        'b_u2': rnd(ks[12], (1, 3)),
        # mlptext Linear(H + 8 + 5, 9) split by input block
        'w_t_l': rnd(ks[13], (H, 9)),
        'w_t_t': rnd(ks[14], (time_embedding_dim, 9)),
        'w_t_n': rnd(ks[15], (5, 9)),
        'b_t': rnd(ks[16], (1, 9)),
    }
    return params


# ----------------------------------------------------------------------------
# One-time weight fusion / zero-padding into the kernel layout (exact math)
# ----------------------------------------------------------------------------
def pack_params(params):
    wih, whh, bl = params['lstm_wih'], params['lstm_whh'], params['lstm_b']
    E, H = wih.shape[1], wih.shape[2]
    Ep, Hp = _rup(E, 64), _rup(H, 64)

    # fused LSTM gate weights, each gate block zero-padded to Hp lanes.
    # Kernel gate order [i | f | o | g]: sigmoid applies to one contiguous
    # 3*Hp slab and tanh to the final Hp slab.
    order = (0, 1, 3, 2)   # params are stored i,f,g,o
    w_ih = jnp.concatenate([_pad_to(wih[k], (Ep, Hp)) for k in order], axis=1)
    w_hh = jnp.concatenate([_pad_to(whh[k], (Hp, Hp)) for k in order], axis=1)
    b_l = jnp.concatenate([_pad_to(bl[k], (1, Hp)) for k in order], axis=1)

    enc_dim = params['w_enc_u'].shape[1]
    enc_in = params['w_enc_u'].shape[0] + params['w_enc_n'].shape[0]   # 77
    EncP, EncInP = _rup(enc_dim, 64), _rup(enc_in, 8)
    w_enc = _pad_to(jnp.concatenate([params['w_enc_u'], params['w_enc_n']], axis=0),
                    (EncInP, EncP))
    b_enc = _pad_to(params['b_enc'], (1, EncP))
    # mlpuser and mlpuser2 fused into one (enc, 6) matmul
    w_user = _pad_to(jnp.concatenate([params['w_u'], params['w_u2']], axis=1), (EncP, 6))
    b_user = jnp.concatenate([params['b_u'], params['b_u2']], axis=1)

    # time Linear (33->8, no bias) folded into the text head, then stacked with w_t_n
    w_tt = jnp.concatenate([params['w_time'] @ params['w_t_t'], params['w_t_n']], axis=0)
    w_t_l = _pad_to(params['w_t_l'], (Hp, 9))

    return dict(user_emb=params['user_emb'], text_emb=params['text_emb'],
                w_ih=w_ih.astype(jnp.bfloat16),      # bf16 MXU operands, f32 accumulation
                w_hh=w_hh.astype(jnp.bfloat16),
                b_lstm=b_l,
                w_enc=w_enc, b_enc=b_enc, w_user=w_user, b_user=b_user,
                w_t_l=w_t_l, w_tt=w_tt, b_t=params['b_t'],
                dims=dict(E=E, H=H, Ep=Ep, Hp=Hp, enc_in=enc_in, enc_in_p=EncInP))


# ----------------------------------------------------------------------------
# Forward wrapper (tiny XLA glue: embedding gathers, concat, padding)
# ----------------------------------------------------------------------------
def ed_model_forward(kp, sen, user, time, seq_lengths, num4, textnum):
    B, S = sen.shape
    d = kp['dims']
    E, Ep, Hp = d['E'], d['Ep'], d['Hp']
    Bp = _rup(B, 8)
    EncP = kp['w_enc'].shape[1]

    user_embeds = jnp.take(kp['user_emb'], user, axis=0).astype(jnp.float32)   # (B, 60)
    text_embeds = jnp.take(kp['text_emb'], sen, axis=0).astype(jnp.float32)    # (B, S, E)

    # time-major, zero-padded to (S, Bp, Ep), flattened for the hoisted matmul
    x = jnp.transpose(text_embeds, (1, 0, 2))
    x = jnp.pad(x, ((0, 0), (0, Bp - B), (0, Ep - E))).reshape(S * Bp, Ep)
    x = x.astype(jnp.bfloat16)

    enc_in = jnp.concatenate([user_embeds, num4.astype(jnp.float32)], axis=1)  # (B, 77)
    enc_in = jnp.pad(enc_in, ((0, Bp - B), (0, d['enc_in_p'] - d['enc_in'])))

    tt = jnp.concatenate([time.astype(jnp.float32),
                          textnum.astype(jnp.float32)], axis=1)                # (B, 38)
    lens = jnp.asarray(seq_lengths, jnp.int32).reshape(B)

    args = (lens, x, kp['w_ih'], kp['w_hh'], kp['b_lstm'],
            enc_in, kp['w_enc'], kp['b_enc'], kp['w_user'], kp['b_user'],
            tt, kp['w_t_l'], kp['w_tt'], kp['b_t'])

    # Advisory cost estimate so XLA overlaps wrapper-side gathers/padding with
    # the kernel's weight DMAs instead of serializing around the custom call.
    flops = int(2 * S * Bp * Ep * 4 * Hp        # hoisted input->gate projection
                + 2 * S * Bp * Hp * 4 * Hp      # recurrent h @ w_hh
                + 2 * Bp * d['enc_in_p'] * EncP
                + 2 * Bp * EncP * 6
                + 2 * B * kp['w_tt'].shape[0] * 9
                + 2 * Bp * Hp * 9)
    transcendentals = int(S * Bp * 5 * Hp + Bp * 9)
    bytes_accessed = int(sum(int(a.size) * a.dtype.itemsize for a in args) + B * 3 * 4)

    vmem = pl.BlockSpec(memory_space=pltpu.MemorySpace.VMEM)
    smem = pl.BlockSpec(memory_space=pltpu.MemorySpace.SMEM)

    # TODO(synk): for real serving, add a batch-tile grid (constant index_maps
    # for the weights, dimension_semantics=("parallel",)) so weights/call
    # overhead amortize and v7x's second TensorCore is used; at B=2 it is moot.
    return pl.pallas_call(
        partial(ed_fused_kernel, B=B, S=S, Bp=Bp, Hp=Hp),
        out_shape=jax.ShapeDtypeStruct((B, 3), jnp.float32),
        in_specs=[smem] + [vmem] * 13,
        out_specs=vmem,
        scratch_shapes=[pltpu.VMEM((S * Bp, 4 * Hp), jnp.float32),   # hoisted gate pre-acts
                        pltpu.VMEM((S, Bp, Hp), jnp.float32),        # per-step hidden states
                        pltpu.VMEM((Bp, Hp), jnp.float32)],          # gathered id2 rows
        cost_estimate=pl.CostEstimate(flops=flops,
                                      transcendentals=transcendentals,
                                      bytes_accessed=bytes_accessed),
    )(*args)


# ----------------------------------------------------------------------------
if __name__ == "__main__":
    key = jax.random.PRNGKey(0)
    k_par, k_sen, k_usr, k_time, k_n4, k_tn = jax.random.split(key, 6)

    # small shapes consistent with the module
    B, S = 2, 8
    len_userdic, len_textdic = 20, 100

    params = init_params(k_par, len_userdic, len_textdic)
    kp = pack_params(params)

    # lengths sorted descending and max == S (as the PyTorch .view() assumes)
    seq_lengths = jnp.array([S, 5], dtype=jnp.int32)

    sen = jax.random.randint(k_sen, (B, S), 1, len_textdic, dtype=jnp.int32)
    pad_mask = jnp.arange(S)[None, :] < seq_lengths[:, None]
    sen = jnp.where(pad_mask, sen, 0)           # padding tokens -> index 0 (zero row)

    user = jax.random.randint(k_usr, (B,), 1, len_userdic, dtype=jnp.int32)
    time = jax.random.normal(k_time, (B, TIMEDIM), dtype=jnp.float32)
    num4 = jax.random.normal(k_n4, (B, 17), dtype=jnp.float32)
    textnum = jax.random.normal(k_tn, (B, 5), dtype=jnp.float32)

    out = ed_model_forward(kp, sen, user, time, seq_lengths, num4, textnum)
    out = jax.block_until_ready(out)
    assert out.shape == (B, 3) and out.dtype == jnp.float32
    print("KERNEL_OK")
</pallas_src>

<mosaic_0001>
module attributes {stable_mosaic.version = 11 : i64} {
  func.func @ed_fused_kernel(%arg0: memref<2xi32, #tpu.memory_space<smem>>, %arg1: memref<64x64xbf16, #tpu.memory_space<vmem>>, %arg2: memref<64x256xbf16, #tpu.memory_space<vmem>>, %arg3: memref<64x256xbf16, #tpu.memory_space<vmem>>, %arg4: memref<1x256xf32, #tpu.memory_space<vmem>>, %arg5: memref<8x80xf32, #tpu.memory_space<vmem>>, %arg6: memref<80x64xf32, #tpu.memory_space<vmem>>, %arg7: memref<1x64xf32, #tpu.memory_space<vmem>>, %arg8: memref<64x6xf32, #tpu.memory_space<vmem>>, %arg9: memref<1x6xf32, #tpu.memory_space<vmem>>, %arg10: memref<2x38xf32, #tpu.memory_space<vmem>>, %arg11: memref<64x9xf32, #tpu.memory_space<vmem>>, %arg12: memref<38x9xf32, #tpu.memory_space<vmem>>, %arg13: memref<1x9xf32, #tpu.memory_space<vmem>>, %arg14: memref<2x3xf32, #tpu.memory_space<vmem>>, %arg15: memref<64x256xf32, #tpu.memory_space<vmem>>, %arg16: memref<8x8x64xf32, #tpu.memory_space<vmem>>, %arg17: memref<8x64xf32, #tpu.memory_space<vmem>>) attributes {dimension_semantics = [], scalar_prefetch = 0 : i64, scratch_operands = 3 : i64, tpu.core_type = #tpu.core_type<tc>} {
    %c0 = arith.constant 0 : index
    %c0_0 = arith.constant 0 : index
    %0 = vector.load %arg1[%c0, %c0_0] : memref<64x64xbf16, #tpu.memory_space<vmem>>, vector<64x64xbf16>
    %c0_1 = arith.constant 0 : index
    %c0_2 = arith.constant 0 : index
    %1 = vector.load %arg2[%c0_1, %c0_2] : memref<64x256xbf16, #tpu.memory_space<vmem>>, vector<64x256xbf16>
    %cst = arith.constant dense<0.000000e+00> : vector<64x256xf32>
    %2 = tpu.matmul %0, %1, %cst {dimension_numbers = #tpu.dot_dimension_numbers<[1], [0], [0], [1], [0, 0, 1, 1], [], []>} : vector<64x64xbf16>, vector<64x256xbf16>, vector<64x256xf32> -> vector<64x256xf32>
    %c0_3 = arith.constant 0 : index
    %c0_4 = arith.constant 0 : index
    %3 = vector.load %arg4[%c0_3, %c0_4] : memref<1x256xf32, #tpu.memory_space<vmem>>, vector<1x256xf32>
    %4 = vector.broadcast %3 : vector<1x256xf32> to vector<64x256xf32>
    %5 = arith.addf %2, %4 : vector<64x256xf32>
    %c0_5 = arith.constant 0 : index
    %c0_6 = arith.constant 0 : index
    %6 = vector.load %arg15[%c0_5, %c0_6] : memref<64x256xf32, #tpu.memory_space<vmem>>, vector<64x256xf32>
    tpu.vector_store %arg15[%c0_5, %c0_6], %5 {strides = array<i32>} : memref<64x256xf32, #tpu.memory_space<vmem>>, vector<64x256xf32>,
    %c0_7 = arith.constant 0 : index
    %c0_8 = arith.constant 0 : index
    %7 = vector.load %arg5[%c0_7, %c0_8] : memref<8x80xf32, #tpu.memory_space<vmem>>, vector<8x80xf32>
    %c0_9 = arith.constant 0 : index
    %c0_10 = arith.constant 0 : index
    %8 = vector.load %arg6[%c0_9, %c0_10] : memref<80x64xf32, #tpu.memory_space<vmem>>, vector<80x64xf32>
    %cst_11 = arith.constant dense<0.000000e+00> : vector<8x64xf32>
    %9 = tpu.matmul %7, %8, %cst_11 {dimension_numbers = #tpu.dot_dimension_numbers<[1], [0], [0], [1], [0, 0, 1, 1], [], []>} : vector<8x80xf32>, vector<80x64xf32>, vector<8x64xf32> -> vector<8x64xf32>
    %c0_12 = arith.constant 0 : index
    %c0_13 = arith.constant 0 : index
    %10 = vector.load %arg7[%c0_12, %c0_13] : memref<1x64xf32, #tpu.memory_space<vmem>>, vector<1x64xf32>
    %11 = vector.broadcast %10 : vector<1x64xf32> to vector<8x64xf32>
    %12 = arith.addf %9, %11 : vector<8x64xf32>
    %cst_14 = arith.constant 0.000000e+00 : f32
    %13 = vector.broadcast %cst_14 : f32 to vector<8x64xf32>
    %14 = arith.maximumf %12, %13 : vector<8x64xf32>
    %c0_15 = arith.constant 0 : index
    %c0_16 = arith.constant 0 : index
    %15 = vector.load %arg8[%c0_15, %c0_16] : memref<64x6xf32, #tpu.memory_space<vmem>>, vector<64x6xf32>
    %cst_17 = arith.constant dense<0.000000e+00> : vector<8x6xf32>
    %16 = tpu.matmul %14, %15, %cst_17 {dimension_numbers = #tpu.dot_dimension_numbers<[1], [0], [0], [1], [0, 0, 1, 1], [], []>} : vector<8x64xf32>, vector<64x6xf32>, vector<8x6xf32> -> vector<8x6xf32>
    %c0_18 = arith.constant 0 : index
    %c0_19 = arith.constant 0 : index
    %17 = vector.load %arg9[%c0_18, %c0_19] : memref<1x6xf32, #tpu.memory_space<vmem>>, vector<1x6xf32>
    %18 = vector.broadcast %17 : vector<1x6xf32> to vector<8x6xf32>
    %19 = arith.addf %16, %18 : vector<8x6xf32>
    %cst_20 = arith.constant 0.000000e+00 : f32
    %20 = vector.broadcast %cst_20 : f32 to vector<8x6xf32>
    %21 = arith.maximumf %19, %20 : vector<8x6xf32>
    %22 = vector.extract_strided_slice %21 {offsets = [0, 0], sizes = [2, 3], strides = [1, 1]} : vector<8x6xf32> to vector<2x3xf32>
    %23 = vector.extract_strided_slice %21 {offsets = [0, 3], sizes = [2, 3], strides = [1, 1]} : vector<8x6xf32> to vector<2x3xf32>
    %c0_21 = arith.constant 0 : index
    %c0_22 = arith.constant 0 : index
    %24 = vector.load %arg10[%c0_21, %c0_22] : memref<2x38xf32, #tpu.memory_space<vmem>>, vector<2x38xf32>
    %c0_23 = arith.constant 0 : index
    %c0_24 = arith.constant 0 : index
    %25 = vector.load %arg12[%c0_23, %c0_24] : memref<38x9xf32, #tpu.memory_space<vmem>>, vector<38x9xf32>
    %cst_25 = arith.constant dense<0.000000e+00> : vector<2x9xf32>
    %26 = tpu.matmul %24, %25, %cst_25 {dimension_numbers = #tpu.dot_dimension_numbers<[1], [0], [0], [1], [0, 0, 1, 1], [], []>} : vector<2x38xf32>, vector<38x9xf32>, vector<2x9xf32> -> vector<2x9xf32>
    %c0_26 = arith.constant 0 : index
    %c0_27 = arith.constant 0 : index
    %27 = vector.load %arg13[%c0_26, %c0_27] : memref<1x9xf32, #tpu.memory_space<vmem>>, vector<1x9xf32>
    %28 = vector.broadcast %27 : vector<1x9xf32> to vector<2x9xf32>
    %29 = arith.addf %26, %28 : vector<2x9xf32>
    %c0_28 = arith.constant 0 : index
    %c0_29 = arith.constant 0 : index
    %30 = vector.load %arg3[%c0_28, %c0_29] : memref<64x256xbf16, #tpu.memory_space<vmem>>, vector<64x256xbf16>
    %cst_30 = arith.constant 0.000000e+00 : f32
    %31 = vector.broadcast %cst_30 : f32 to vector<8x64xf32>
    %cst_31 = arith.constant 0.000000e+00 : f32
    %32 = vector.broadcast %cst_31 : f32 to vector<8x64xf32>
    %c0_i32 = arith.constant 0 : i32
    %c8_i32 = arith.constant 8 : i32
    %33 = arith.muli %c0_i32, %c8_i32 : i32
    %34 = tpu.assume_multiple %33, 8 : i32
    %35 = arith.index_cast %34 : i32 to index
    %c0_32 = arith.constant 0 : index
    %36 = vector.load %arg15[%35, %c0_32] : memref<64x256xf32, #tpu.memory_space<vmem>>, vector<8x256xf32>
    %37 = arith.truncf %31 : vector<8x64xf32> to vector<8x64xbf16>
    %cst_33 = arith.constant dense<0.000000e+00> : vector<8x256xf32>
    %38 = tpu.matmul %37, %30, %cst_33 {dimension_numbers = #tpu.dot_dimension_numbers<[1], [0], [0], [1], [0, 0, 1, 1], [], []>} : vector<8x64xbf16>, vector<64x256xbf16>, vector<8x256xf32> -> vector<8x256xf32>
    %39 = arith.addf %36, %38 : vector<8x256xf32>
    %40 = vector.extract_strided_slice %39 {offsets = [0, 0], sizes = [8, 192], strides = [1, 1]} : vector<8x256xf32> to vector<8x192xf32>
    %41 = arith.negf %40 : vector<8x192xf32>
    %42 = math.exp %41 : vector<8x192xf32>
    %cst_34 = arith.constant 1.000000e+00 : f32
    %43 = vector.broadcast %cst_34 : f32 to vector<8x192xf32>
    %44 = arith.addf %43, %42 : vector<8x192xf32>
    %45 = arith.divf %43, %44 : vector<8x192xf32>
    %46 = vector.extract_strided_slice %45 {offsets = [0, 0], sizes = [8, 64], strides = [1, 1]} : vector<8x192xf32> to vector<8x64xf32>
    %47 = vector.extract_strided_slice %45 {offsets = [0, 64], sizes = [8, 64], strides = [1, 1]} : vector<8x192xf32> to vector<8x64xf32>
    %48 = vector.extract_strided_slice %45 {offsets = [0, 128], sizes = [8, 64], strides = [1, 1]} : vector<8x192xf32> to vector<8x64xf32>
    %49 = vector.extract_strided_slice %39 {offsets = [0, 192], sizes = [8, 64], strides = [1, 1]} : vector<8x256xf32> to vector<8x64xf32>
    %50 = math.tanh %49 : vector<8x64xf32>
    %51 = arith.mulf %47, %32 : vector<8x64xf32>
    %52 = arith.mulf %46, %50 : vector<8x64xf32>
    %53 = arith.addf %51, %52 : vector<8x64xf32>
    %54 = math.tanh %53 : vector<8x64xf32>
    %55 = arith.mulf %48, %54 : vector<8x64xf32>
    %56 = arith.index_cast %c0_i32 : i32 to index
    %c0_35 = arith.constant 0 : index
    %c0_36 = arith.constant 0 : index
    %57 = vector.load %arg16[%56, %c0_35, %c0_36] : memref<8x8x64xf32, #tpu.memory_space<vmem>>, vector<1x8x64xf32>
    %58 = vector.shape_cast %57 : vector<1x8x64xf32> to vector<8x64xf32>
    %59 = vector.shape_cast %55 : vector<8x64xf32> to vector<1x8x64xf32>
    tpu.vector_store %arg16[%56, %c0_35, %c0_36], %59 {strides = array<i32>} : memref<8x8x64xf32, #tpu.memory_space<vmem>>, vector<1x8x64xf32>,
    %c1_i32 = arith.constant 1 : i32
    %c8_i32_37 = arith.constant 8 : i32
    %60 = arith.muli %c1_i32, %c8_i32_37 : i32
    %61 = tpu.assume_multiple %60, 8 : i32
    %62 = arith.index_cast %61 : i32 to index
    %c0_38 = arith.constant 0 : index
    %63 = vector.load %arg15[%62, %c0_38] : memref<64x256xf32, #tpu.memory_space<vmem>>, vector<8x256xf32>
    %64 = arith.truncf %55 : vector<8x64xf32> to vector<8x64xbf16>
    %cst_39 = arith.constant dense<0.000000e+00> : vector<8x256xf32>
    %65 = tpu.matmul %64, %30, %cst_39 {dimension_numbers = #tpu.dot_dimension_numbers<[1], [0], [0], [1], [0, 0, 1, 1], [], []>} : vector<8x64xbf16>, vector<64x256xbf16>, vector<8x256xf32> -> vector<8x256xf32>
    %66 = arith.addf %63, %65 : vector<8x256xf32>
    %67 = vector.extract_strided_slice %66 {offsets = [0, 0], sizes = [8, 192], strides = [1, 1]} : vector<8x256xf32> to vector<8x192xf32>
    %68 = arith.negf %67 : vector<8x192xf32>
    %69 = math.exp %68 : vector<8x192xf32>
    %cst_40 = arith.constant 1.000000e+00 : f32
    %70 = vector.broadcast %cst_40 : f32 to vector<8x192xf32>
    %71 = arith.addf %70, %69 : vector<8x192xf32>
    %72 = arith.divf %70, %71 : vector<8x192xf32>
    %73 = vector.extract_strided_slice %72 {offsets = [0, 0], sizes = [8, 64], strides = [1, 1]} : vector<8x192xf32> to vector<8x64xf32>
    %74 = vector.extract_strided_slice %72 {offsets = [0, 64], sizes = [8, 64], strides = [1, 1]} : vector<8x192xf32> to vector<8x64xf32>
    %75 = vector.extract_strided_slice %72 {offsets = [0, 128], sizes = [8, 64], strides = [1, 1]} : vector<8x192xf32> to vector<8x64xf32>
    %76 = vector.extract_strided_slice %66 {offsets = [0, 192], sizes = [8, 64], strides = [1, 1]} : vector<8x256xf32> to vector<8x64xf32>
    %77 = math.tanh %76 : vector<8x64xf32>
    %78 = arith.mulf %74, %53 : vector<8x64xf32>
    %79 = arith.mulf %73, %77 : vector<8x64xf32>
    %80 = arith.addf %78, %79 : vector<8x64xf32>
    %81 = math.tanh %80 : vector<8x64xf32>
    %82 = arith.mulf %75, %81 : vector<8x64xf32>
    %83 = arith.index_cast %c1_i32 : i32 to index
    %c0_41 = arith.constant 0 : index
    %c0_42 = arith.constant 0 : index
    %84 = vector.load %arg16[%83, %c0_41, %c0_42] : memref<8x8x64xf32, #tpu.memory_space<vmem>>, vector<1x8x64xf32>
    %85 = vector.shape_cast %84 : vector<1x8x64xf32> to vector<8x64xf32>
    %86 = vector.shape_cast %82 : vector<8x64xf32> to vector<1x8x64xf32>
    tpu.vector_store %arg16[%83, %c0_41, %c0_42], %86 {strides = array<i32>} : memref<8x8x64xf32, #tpu.memory_space<vmem>>, vector<1x8x64xf32>,
    %c2_i32 = arith.constant 2 : i32
    %c8_i32_43 = arith.constant 8 : i32
    %87 = arith.muli %c2_i32, %c8_i32_43 : i32
    %88 = tpu.assume_multiple %87, 8 : i32
    %89 = arith.index_cast %88 : i32 to index
    %c0_44 = arith.constant 0 : index
    %90 = vector.load %arg15[%89, %c0_44] : memref<64x256xf32, #tpu.memory_space<vmem>>, vector<8x256xf32>
    %91 = arith.truncf %82 : vector<8x64xf32> to vector<8x64xbf16>
    %cst_45 = arith.constant dense<0.000000e+00> : vector<8x256xf32>
    %92 = tpu.matmul %91, %30, %cst_45 {dimension_numbers = #tpu.dot_dimension_numbers<[1], [0], [0], [1], [0, 0, 1, 1], [], []>} : vector<8x64xbf16>, vector<64x256xbf16>, vector<8x256xf32> -> vector<8x256xf32>
    %93 = arith.addf %90, %92 : vector<8x256xf32>
    %94 = vector.extract_strided_slice %93 {offsets = [0, 0], sizes = [8, 192], strides = [1, 1]} : vector<8x256xf32> to vector<8x192xf32>
    %95 = arith.negf %94 : vector<8x192xf32>
    %96 = math.exp %95 : vector<8x192xf32>
    %cst_46 = arith.constant 1.000000e+00 : f32
    %97 = vector.broadcast %cst_46 : f32 to vector<8x192xf32>
    %98 = arith.addf %97, %96 : vector<8x192xf32>
    %99 = arith.divf %97, %98 : vector<8x192xf32>
    %100 = vector.extract_strided_slice %99 {offsets = [0, 0], sizes = [8, 64], strides = [1, 1]} : vector<8x192xf32> to vector<8x64xf32>
    %101 = vector.extract_strided_slice %99 {offsets = [0, 64], sizes = [8, 64], strides = [1, 1]} : vector<8x192xf32> to vector<8x64xf32>
    %102 = vector.extract_strided_slice %99 {offsets = [0, 128], sizes = [8, 64], strides = [1, 1]} : vector<8x192xf32> to vector<8x64xf32>
    %103 = vector.extract_strided_slice %93 {offsets = [0, 192], sizes = [8, 64], strides = [1, 1]} : vector<8x256xf32> to vector<8x64xf32>
    %104 = math.tanh %103 : vector<8x64xf32>
    %105 = arith.mulf %101, %80 : vector<8x64xf32>
    %106 = arith.mulf %100, %104 : vector<8x64xf32>
    %107 = arith.addf %105, %106 : vector<8x64xf32>
    %108 = math.tanh %107 : vector<8x64xf32>
    %109 = arith.mulf %102, %108 : vector<8x64xf32>
    %110 = arith.index_cast %c2_i32 : i32 to index
    %c0_47 = arith.constant 0 : index
    %c0_48 = arith.constant 0 : index
    %111 = vector.load %arg16[%110, %c0_47, %c0_48] : memref<8x8x64xf32, #tpu.memory_space<vmem>>, vector<1x8x64xf32>
    %112 = vector.shape_cast %111 : vector<1x8x64xf32> to vector<8x64xf32>
    %113 = vector.shape_cast %109 : vector<8x64xf32> to vector<1x8x64xf32>
    tpu.vector_store %arg16[%110, %c0_47, %c0_48], %113 {strides = array<i32>} : memref<8x8x64xf32, #tpu.memory_space<vmem>>, vector<1x8x64xf32>,
    %c3_i32 = arith.constant 3 : i32
    %c8_i32_49 = arith.constant 8 : i32
    %114 = arith.muli %c3_i32, %c8_i32_49 : i32
    %115 = tpu.assume_multiple %114, 8 : i32
    %116 = arith.index_cast %115 : i32 to index
    %c0_50 = arith.constant 0 : index
    %117 = vector.load %arg15[%116, %c0_50] : memref<64x256xf32, #tpu.memory_space<vmem>>, vector<8x256xf32>
    %118 = arith.truncf %109 : vector<8x64xf32> to vector<8x64xbf16>
    %cst_51 = arith.constant dense<0.000000e+00> : vector<8x256xf32>
    %119 = tpu.matmul %118, %30, %cst_51 {dimension_numbers = #tpu.dot_dimension_numbers<[1], [0], [0], [1], [0, 0, 1, 1], [], []>} : vector<8x64xbf16>, vector<64x256xbf16>, vector<8x256xf32> -> vector<8x256xf32>
    %120 = arith.addf %117, %119 : vector<8x256xf32>
    %121 = vector.extract_strided_slice %120 {offsets = [0, 0], sizes = [8, 192], strides = [1, 1]} : vector<8x256xf32> to vector<8x192xf32>
    %122 = arith.negf %121 : vector<8x192xf32>
    %123 = math.exp %122 : vector<8x192xf32>
    %cst_52 = arith.constant 1.000000e+00 : f32
    %124 = vector.broadcast %cst_52 : f32 to vector<8x192xf32>
    %125 = arith.addf %124, %123 : vector<8x192xf32>
    %126 = arith.divf %124, %125 : vector<8x192xf32>
    %127 = vector.extract_strided_slice %126 {offsets = [0, 0], sizes = [8, 64], strides = [1, 1]} : vector<8x192xf32> to vector<8x64xf32>
    %128 = vector.extract_strided_slice %126 {offsets = [0, 64], sizes = [8, 64], strides = [1, 1]} : vector<8x192xf32> to vector<8x64xf32>
    %129 = vector.extract_strided_slice %126 {offsets = [0, 128], sizes = [8, 64], strides = [1, 1]} : vector<8x192xf32> to vector<8x64xf32>
    %130 = vector.extract_strided_slice %120 {offsets = [0, 192], sizes = [8, 64], strides = [1, 1]} : vector<8x256xf32> to vector<8x64xf32>
    %131 = math.tanh %130 : vector<8x64xf32>
    %132 = arith.mulf %128, %107 : vector<8x64xf32>
    %133 = arith.mulf %127, %131 : vector<8x64xf32>
    %134 = arith.addf %132, %133 : vector<8x64xf32>
    %135 = math.tanh %134 : vector<8x64xf32>
    %136 = arith.mulf %129, %135 : vector<8x64xf32>
    %137 = arith.index_cast %c3_i32 : i32 to index
    %c0_53 = arith.constant 0 : index
    %c0_54 = arith.constant 0 : index
    %138 = vector.load %arg16[%137, %c0_53, %c0_54] : memref<8x8x64xf32, #tpu.memory_space<vmem>>, vector<1x8x64xf32>
    %139 = vector.shape_cast %138 : vector<1x8x64xf32> to vector<8x64xf32>
    %140 = vector.shape_cast %136 : vector<8x64xf32> to vector<1x8x64xf32>
    tpu.vector_store %arg16[%137, %c0_53, %c0_54], %140 {strides = array<i32>} : memref<8x8x64xf32, #tpu.memory_space<vmem>>, vector<1x8x64xf32>,
    %c4_i32 = arith.constant 4 : i32
    %c8_i32_55 = arith.constant 8 : i32
    %141 = arith.muli %c4_i32, %c8_i32_55 : i32
    %142 = tpu.assume_multiple %141, 8 : i32
    %143 = arith.index_cast %142 : i32 to index
    %c0_56 = arith.constant 0 : index
    %144 = vector.load %arg15[%143, %c0_56] : memref<64x256xf32, #tpu.memory_space<vmem>>, vector<8x256xf32>
    %145 = arith.truncf %136 : vector<8x64xf32> to vector<8x64xbf16>
    %cst_57 = arith.constant dense<0.000000e+00> : vector<8x256xf32>
    %146 = tpu.matmul %145, %30, %cst_57 {dimension_numbers = #tpu.dot_dimension_numbers<[1], [0], [0], [1], [0, 0, 1, 1], [], []>} : vector<8x64xbf16>, vector<64x256xbf16>, vector<8x256xf32> -> vector<8x256xf32>
    %147 = arith.addf %144, %146 : vector<8x256xf32>
    %148 = vector.extract_strided_slice %147 {offsets = [0, 0], sizes = [8, 192], strides = [1, 1]} : vector<8x256xf32> to vector<8x192xf32>
    %149 = arith.negf %148 : vector<8x192xf32>
    %150 = math.exp %149 : vector<8x192xf32>
    %cst_58 = arith.constant 1.000000e+00 : f32
    %151 = vector.broadcast %cst_58 : f32 to vector<8x192xf32>
    %152 = arith.addf %151, %150 : vector<8x192xf32>
    %153 = arith.divf %151, %152 : vector<8x192xf32>
    %154 = vector.extract_strided_slice %153 {offsets = [0, 0], sizes = [8, 64], strides = [1, 1]} : vector<8x192xf32> to vector<8x64xf32>
    %155 = vector.extract_strided_slice %153 {offsets = [0, 64], sizes = [8, 64], strides = [1, 1]} : vector<8x192xf32> to vector<8x64xf32>
    %156 = vector.extract_strided_slice %153 {offsets = [0, 128], sizes = [8, 64], strides = [1, 1]} : vector<8x192xf32> to vector<8x64xf32>
    %157 = vector.extract_strided_slice %147 {offsets = [0, 192], sizes = [8, 64], strides = [1, 1]} : vector<8x256xf32> to vector<8x64xf32>
    %158 = math.tanh %157 : vector<8x64xf32>
    %159 = arith.mulf %155, %134 : vector<8x64xf32>
    %160 = arith.mulf %154, %158 : vector<8x64xf32>
    %161 = arith.addf %159, %160 : vector<8x64xf32>
    %162 = math.tanh %161 : vector<8x64xf32>
    %163 = arith.mulf %156, %162 : vector<8x64xf32>
    %164 = arith.index_cast %c4_i32 : i32 to index
    %c0_59 = arith.constant 0 : index
    %c0_60 = arith.constant 0 : index
    %165 = vector.load %arg16[%164, %c0_59, %c0_60] : memref<8x8x64xf32, #tpu.memory_space<vmem>>, vector<1x8x64xf32>
    %166 = vector.shape_cast %165 : vector<1x8x64xf32> to vector<8x64xf32>
    %167 = vector.shape_cast %163 : vector<8x64xf32> to vector<1x8x64xf32>
    tpu.vector_store %arg16[%164, %c0_59, %c0_60], %167 {strides = array<i32>} : memref<8x8x64xf32, #tpu.memory_space<vmem>>, vector<1x8x64xf32>,
    %c5_i32 = arith.constant 5 : i32
    %c8_i32_61 = arith.constant 8 : i32
    %168 = arith.muli %c5_i32, %c8_i32_61 : i32
    %169 = tpu.assume_multiple %168, 8 : i32
    %170 = arith.index_cast %169 : i32 to index
    %c0_62 = arith.constant 0 : index
    %171 = vector.load %arg15[%170, %c0_62] : memref<64x256xf32, #tpu.memory_space<vmem>>, vector<8x256xf32>
    %172 = arith.truncf %163 : vector<8x64xf32> to vector<8x64xbf16>
    %cst_63 = arith.constant dense<0.000000e+00> : vector<8x256xf32>
    %173 = tpu.matmul %172, %30, %cst_63 {dimension_numbers = #tpu.dot_dimension_numbers<[1], [0], [0], [1], [0, 0, 1, 1], [], []>} : vector<8x64xbf16>, vector<64x256xbf16>, vector<8x256xf32> -> vector<8x256xf32>
    %174 = arith.addf %171, %173 : vector<8x256xf32>
    %175 = vector.extract_strided_slice %174 {offsets = [0, 0], sizes = [8, 192], strides = [1, 1]} : vector<8x256xf32> to vector<8x192xf32>
    %176 = arith.negf %175 : vector<8x192xf32>
    %177 = math.exp %176 : vector<8x192xf32>
    %cst_64 = arith.constant 1.000000e+00 : f32
    %178 = vector.broadcast %cst_64 : f32 to vector<8x192xf32>
    %179 = arith.addf %178, %177 : vector<8x192xf32>
    %180 = arith.divf %178, %179 : vector<8x192xf32>
    %181 = vector.extract_strided_slice %180 {offsets = [0, 0], sizes = [8, 64], strides = [1, 1]} : vector<8x192xf32> to vector<8x64xf32>
    %182 = vector.extract_strided_slice %180 {offsets = [0, 64], sizes = [8, 64], strides = [1, 1]} : vector<8x192xf32> to vector<8x64xf32>
    %183 = vector.extract_strided_slice %180 {offsets = [0, 128], sizes = [8, 64], strides = [1, 1]} : vector<8x192xf32> to vector<8x64xf32>
    %184 = vector.extract_strided_slice %174 {offsets = [0, 192], sizes = [8, 64], strides = [1, 1]} : vector<8x256xf32> to vector<8x64xf32>
    %185 = math.tanh %184 : vector<8x64xf32>
    %186 = arith.mulf %182, %161 : vector<8x64xf32>
    %187 = arith.mulf %181, %185 : vector<8x64xf32>
    %188 = arith.addf %186, %187 : vector<8x64xf32>
    %189 = math.tanh %188 : vector<8x64xf32>
    %190 = arith.mulf %183, %189 : vector<8x64xf32>
    %191 = arith.index_cast %c5_i32 : i32 to index
    %c0_65 = arith.constant 0 : index
    %c0_66 = arith.constant 0 : index
    %192 = vector.load %arg16[%191, %c0_65, %c0_66] : memref<8x8x64xf32, #tpu.memory_space<vmem>>, vector<1x8x64xf32>
    %193 = vector.shape_cast %192 : vector<1x8x64xf32> to vector<8x64xf32>
    %194 = vector.shape_cast %190 : vector<8x64xf32> to vector<1x8x64xf32>
    tpu.vector_store %arg16[%191, %c0_65, %c0_66], %194 {strides = array<i32>} : memref<8x8x64xf32, #tpu.memory_space<vmem>>, vector<1x8x64xf32>,
    %c6_i32 = arith.constant 6 : i32
    %c8_i32_67 = arith.constant 8 : i32
    %195 = arith.muli %c6_i32, %c8_i32_67 : i32
    %196 = tpu.assume_multiple %195, 8 : i32
    %197 = arith.index_cast %196 : i32 to index
    %c0_68 = arith.constant 0 : index
    %198 = vector.load %arg15[%197, %c0_68] : memref<64x256xf32, #tpu.memory_space<vmem>>, vector<8x256xf32>
    %199 = arith.truncf %190 : vector<8x64xf32> to vector<8x64xbf16>
    %cst_69 = arith.constant dense<0.000000e+00> : vector<8x256xf32>
    %200 = tpu.matmul %199, %30, %cst_69 {dimension_numbers = #tpu.dot_dimension_numbers<[1], [0], [0], [1], [0, 0, 1, 1], [], []>} : vector<8x64xbf16>, vector<64x256xbf16>, vector<8x256xf32> -> vector<8x256xf32>
    %201 = arith.addf %198, %200 : vector<8x256xf32>
    %202 = vector.extract_strided_slice %201 {offsets = [0, 0], sizes = [8, 192], strides = [1, 1]} : vector<8x256xf32> to vector<8x192xf32>
    %203 = arith.negf %202 : vector<8x192xf32>
    %204 = math.exp %203 : vector<8x192xf32>
    %cst_70 = arith.constant 1.000000e+00 : f32
    %205 = vector.broadcast %cst_70 : f32 to vector<8x192xf32>
    %206 = arith.addf %205, %204 : vector<8x192xf32>
    %207 = arith.divf %205, %206 : vector<8x192xf32>
    %208 = vector.extract_strided_slice %207 {offsets = [0, 0], sizes = [8, 64], strides = [1, 1]} : vector<8x192xf32> to vector<8x64xf32>
    %209 = vector.extract_strided_slice %207 {offsets = [0, 64], sizes = [8, 64], strides = [1, 1]} : vector<8x192xf32> to vector<8x64xf32>
    %210 = vector.extract_strided_slice %207 {offsets = [0, 128], sizes = [8, 64], strides = [1, 1]} : vector<8x192xf32> to vector<8x64xf32>
    %211 = vector.extract_strided_slice %201 {offsets = [0, 192], sizes = [8, 64], strides = [1, 1]} : vector<8x256xf32> to vector<8x64xf32>
    %212 = math.tanh %211 : vector<8x64xf32>
    %213 = arith.mulf %209, %188 : vector<8x64xf32>
    %214 = arith.mulf %208, %212 : vector<8x64xf32>
    %215 = arith.addf %213, %214 : vector<8x64xf32>
    %216 = math.tanh %215 : vector<8x64xf32>
    %217 = arith.mulf %210, %216 : vector<8x64xf32>
    %218 = arith.index_cast %c6_i32 : i32 to index
    %c0_71 = arith.constant 0 : index
    %c0_72 = arith.constant 0 : index
    %219 = vector.load %arg16[%218, %c0_71, %c0_72] : memref<8x8x64xf32, #tpu.memory_space<vmem>>, vector<1x8x64xf32>
    %220 = vector.shape_cast %219 : vector<1x8x64xf32> to vector<8x64xf32>
    %221 = vector.shape_cast %217 : vector<8x64xf32> to vector<1x8x64xf32>
    tpu.vector_store %arg16[%218, %c0_71, %c0_72], %221 {strides = array<i32>} : memref<8x8x64xf32, #tpu.memory_space<vmem>>, vector<1x8x64xf32>,
    %c7_i32 = arith.constant 7 : i32
    %c8_i32_73 = arith.constant 8 : i32
    %222 = arith.muli %c7_i32, %c8_i32_73 : i32
    %223 = tpu.assume_multiple %222, 8 : i32
    %224 = arith.index_cast %223 : i32 to index
    %c0_74 = arith.constant 0 : index
    %225 = vector.load %arg15[%224, %c0_74] : memref<64x256xf32, #tpu.memory_space<vmem>>, vector<8x256xf32>
    %226 = arith.truncf %217 : vector<8x64xf32> to vector<8x64xbf16>
    %cst_75 = arith.constant dense<0.000000e+00> : vector<8x256xf32>
    %227 = tpu.matmul %226, %30, %cst_75 {dimension_numbers = #tpu.dot_dimension_numbers<[1], [0], [0], [1], [0, 0, 1, 1], [], []>} : vector<8x64xbf16>, vector<64x256xbf16>, vector<8x256xf32> -> vector<8x256xf32>
    %228 = arith.addf %225, %227 : vector<8x256xf32>
    %229 = vector.extract_strided_slice %228 {offsets = [0, 0], sizes = [8, 192], strides = [1, 1]} : vector<8x256xf32> to vector<8x192xf32>
    %230 = arith.negf %229 : vector<8x192xf32>
    %231 = math.exp %230 : vector<8x192xf32>
    %cst_76 = arith.constant 1.000000e+00 : f32
    %232 = vector.broadcast %cst_76 : f32 to vector<8x192xf32>
    %233 = arith.addf %232, %231 : vector<8x192xf32>
    %234 = arith.divf %232, %233 : vector<8x192xf32>
    %235 = vector.extract_strided_slice %234 {offsets = [0, 0], sizes = [8, 64], strides = [1, 1]} : vector<8x192xf32> to vector<8x64xf32>
    %236 = vector.extract_strided_slice %234 {offsets = [0, 64], sizes = [8, 64], strides = [1, 1]} : vector<8x192xf32> to vector<8x64xf32>
    %237 = vector.extract_strided_slice %234 {offsets = [0, 128], sizes = [8, 64], strides = [1, 1]} : vector<8x192xf32> to vector<8x64xf32>
    %238 = vector.extract_strided_slice %228 {offsets = [0, 192], sizes = [8, 64], strides = [1, 1]} : vector<8x256xf32> to vector<8x64xf32>
    %239 = math.tanh %238 : vector<8x64xf32>
    %240 = arith.mulf %236, %215 : vector<8x64xf32>
    %241 = arith.mulf %235, %239 : vector<8x64xf32>
    %242 = arith.addf %240, %241 : vector<8x64xf32>
    %243 = math.tanh %242 : vector<8x64xf32>
    %244 = arith.mulf %237, %243 : vector<8x64xf32>
    %245 = arith.index_cast %c7_i32 : i32 to index
    %c0_77 = arith.constant 0 : index
    %c0_78 = arith.constant 0 : index
    %246 = vector.load %arg16[%245, %c0_77, %c0_78] : memref<8x8x64xf32, #tpu.memory_space<vmem>>, vector<1x8x64xf32>
    %247 = vector.shape_cast %246 : vector<1x8x64xf32> to vector<8x64xf32>
    %248 = vector.shape_cast %244 : vector<8x64xf32> to vector<1x8x64xf32>
    tpu.vector_store %arg16[%245, %c0_77, %c0_78], %248 {strides = array<i32>} : memref<8x8x64xf32, #tpu.memory_space<vmem>>, vector<1x8x64xf32>,
    %c8_i32_79 = arith.constant 8 : i32
    %cst_80 = arith.constant 0.000000e+00 : f32
    %249 = vector.broadcast %cst_80 : f32 to vector<8x64xf32>
    %c0_81 = arith.constant 0 : index
    %c0_82 = arith.constant 0 : index
    %250 = vector.load %arg17[%c0_81, %c0_82] : memref<8x64xf32, #tpu.memory_space<vmem>>, vector<8x64xf32>
    tpu.vector_store %arg17[%c0_81, %c0_82], %249 {strides = array<i32>} : memref<8x64xf32, #tpu.memory_space<vmem>>, vector<8x64xf32>,
    %c0_83 = arith.constant 0 : index
    %251 = memref.load %arg0[%c0_83] : memref<2xi32, #tpu.memory_space<smem>>
    %c8_i32_84 = arith.constant 8 : i32
    %252 = arith.cmpi sge, %251, %c8_i32_84 : i32
    %c1_i32_85 = arith.constant 1 : i32
    %c0_i32_86 = arith.constant 0 : i32
    %253 = arith.select %252, %c1_i32_85, %c0_i32_86 : i32
    %c0_i32_87 = arith.constant 0 : i32
    %254 = arith.select %252, %c0_i32_87, %251 : i32
    %c2_i32_88 = arith.constant 2 : i32
    %255 = arith.cmpi sge, %253, %c2_i32_88 : i32
    %c1_i32_89 = arith.constant 1 : i32
    %256 = arith.select %255, %c1_i32_89, %253 : i32
    %c7_i32_90 = arith.constant 7 : i32
    %257 = arith.select %255, %c7_i32_90, %254 : i32
    %258 = arith.index_cast %256 : i32 to index
    %259 = memref.load %arg0[%258] : memref<2xi32, #tpu.memory_space<smem>>
    %260 = arith.index_cast %257 : i32 to index
    %c0_91 = arith.constant 0 : index
    %c0_92 = arith.constant 0 : index
    %261 = vector.load %arg16[%260, %c0_91, %c0_92] : memref<8x8x64xf32, #tpu.memory_space<vmem>>, vector<1x8x64xf32>
    %262 = vector.shape_cast %261 : vector<1x8x64xf32> to vector<8x64xf32>
    %263 = tpu.iota {dimensions = array<i32: 0>} : vector<8x1xi32>
    %264 = vector.broadcast %256 : i32 to vector<8x1xi32>
    %265 = arith.cmpi eq, %263, %264 : vector<8x1xi32>
    %cst_93 = arith.constant 0.000000e+00 : f32
    %266 = vector.shape_cast %265 : vector<8x1xi1> to vector<8x1xi1>
    %267 = vector.broadcast %266 : vector<8x1xi1> to vector<8x64xi1>
    %268 = vector.broadcast %cst_93 : f32 to vector<8x64xf32>
    %269 = arith.select %267, %262, %268 : vector<8x64xi1>, vector<8x64xf32>
    %cst_94 = arith.constant dense<0.000000e+00> : vector<64xf32>
    %270 = vector.multi_reduction <add>, %269, %cst_94 [0] : vector<8x64xf32> to vector<64xf32>
    %271 = vector.shape_cast %270 : vector<64xf32> to vector<1x64xf32>
    %272 = arith.cmpi sgt, %259, %257 : i32
    %cst_95 = arith.constant 0.000000e+00 : f32
    %273 = vector.broadcast %cst_95 : f32 to vector<1x64xf32>
    %274 = arith.select %272, %271, %273 : vector<1x64xf32>
    %c0_96 = arith.constant 0 : index
    %c0_97 = arith.constant 0 : index
    %275 = vector.load %arg17[%c0_96, %c0_97] : memref<8x64xf32, #tpu.memory_space<vmem>>, vector<1x64xf32>
    tpu.vector_store %arg17[%c0_96, %c0_97], %274 {strides = array<i32>} : memref<8x64xf32, #tpu.memory_space<vmem>>, vector<1x64xf32>,
    %c1 = arith.constant 1 : index
    %276 = memref.load %arg0[%c1] : memref<2xi32, #tpu.memory_space<smem>>
    %c8_i32_98 = arith.constant 8 : i32
    %277 = arith.cmpi sge, %276, %c8_i32_98 : i32
    %c2_i32_99 = arith.constant 2 : i32
    %c1_i32_100 = arith.constant 1 : i32
    %278 = arith.select %277, %c2_i32_99, %c1_i32_100 : i32
    %c0_i32_101 = arith.constant 0 : i32
    %279 = arith.select %277, %c0_i32_101, %276 : i32
    %c2_i32_102 = arith.constant 2 : i32
    %280 = arith.cmpi sge, %278, %c2_i32_102 : i32
    %c1_i32_103 = arith.constant 1 : i32
    %281 = arith.select %280, %c1_i32_103, %278 : i32
    %c7_i32_104 = arith.constant 7 : i32
    %282 = arith.select %280, %c7_i32_104, %279 : i32
    %283 = arith.index_cast %281 : i32 to index
    %284 = memref.load %arg0[%283] : memref<2xi32, #tpu.memory_space<smem>>
    %285 = arith.index_cast %282 : i32 to index
    %c0_105 = arith.constant 0 : index
    %c0_106 = arith.constant 0 : index
    %286 = vector.load %arg16[%285, %c0_105, %c0_106] : memref<8x8x64xf32, #tpu.memory_space<vmem>>, vector<1x8x64xf32>
    %287 = vector.shape_cast %286 : vector<1x8x64xf32> to vector<8x64xf32>
    %288 = tpu.iota {dimensions = array<i32: 0>} : vector<8x1xi32>
    %289 = vector.broadcast %281 : i32 to vector<8x1xi32>
    %290 = arith.cmpi eq, %288, %289 : vector<8x1xi32>
    %cst_107 = arith.constant 0.000000e+00 : f32
    %291 = vector.shape_cast %290 : vector<8x1xi1> to vector<8x1xi1>
    %292 = vector.broadcast %291 : vector<8x1xi1> to vector<8x64xi1>
    %293 = vector.broadcast %cst_107 : f32 to vector<8x64xf32>
    %294 = arith.select %292, %287, %293 : vector<8x64xi1>, vector<8x64xf32>
    %cst_108 = arith.constant dense<0.000000e+00> : vector<64xf32>
    %295 = vector.multi_reduction <add>, %294, %cst_108 [0] : vector<8x64xf32> to vector<64xf32>
    %296 = vector.shape_cast %295 : vector<64xf32> to vector<1x64xf32>
    %297 = arith.cmpi sgt, %284, %282 : i32
    %cst_109 = arith.constant 0.000000e+00 : f32
    %298 = vector.broadcast %cst_109 : f32 to vector<1x64xf32>
    %299 = arith.select %297, %296, %298 : vector<1x64xf32>
    %c1_110 = arith.constant 1 : index
    %c0_111 = arith.constant 0 : index
    %300 = vector.load %arg17[%c1_110, %c0_111] : memref<8x64xf32, #tpu.memory_space<vmem>>, vector<1x64xf32>
    tpu.vector_store %arg17[%c1_110, %c0_111], %299 {strides = array<i32>} : memref<8x64xf32, #tpu.memory_space<vmem>>, vector<1x64xf32>,
    %c0_112 = arith.constant 0 : index
    %c0_113 = arith.constant 0 : index
    %301 = vector.load %arg17[%c0_112, %c0_113] : memref<8x64xf32, #tpu.memory_space<vmem>>, vector<8x64xf32>
    %c0_114 = arith.constant 0 : index
    %c0_115 = arith.constant 0 : index
    %302 = vector.load %arg11[%c0_114, %c0_115] : memref<64x9xf32, #tpu.memory_space<vmem>>, vector<64x9xf32>
    %cst_116 = arith.constant dense<0.000000e+00> : vector<8x9xf32>
    %303 = tpu.matmul %301, %302, %cst_116 {dimension_numbers = #tpu.dot_dimension_numbers<[1], [0], [0], [1], [0, 0, 1, 1], [], []>} : vector<8x64xf32>, vector<64x9xf32>, vector<8x9xf32> -> vector<8x9xf32>
    %304 = vector.extract_strided_slice %303 {offsets = [0, 0], sizes = [2, 9], strides = [1, 1]} : vector<8x9xf32> to vector<2x9xf32>
    %305 = arith.addf %304, %29 : vector<2x9xf32>
    %306 = arith.negf %305 : vector<2x9xf32>
    %307 = math.exp %306 : vector<2x9xf32>
    %cst_117 = arith.constant 1.000000e+00 : f32
    %308 = vector.broadcast %cst_117 : f32 to vector<2x9xf32>
    %309 = arith.addf %308, %307 : vector<2x9xf32>
    %310 = arith.divf %308, %309 : vector<2x9xf32>
    %311 = vector.extract_strided_slice %310 {offsets = [0, 0], sizes = [2, 3], strides = [1, 1]} : vector<2x9xf32> to vector<2x3xf32>
    %312 = vector.extract_strided_slice %310 {offsets = [0, 3], sizes = [2, 3], strides = [1, 1]} : vector<2x9xf32> to vector<2x3xf32>
    %313 = arith.addf %311, %312 : vector<2x3xf32>
    %314 = vector.extract_strided_slice %310 {offsets = [0, 6], sizes = [2, 3], strides = [1, 1]} : vector<2x9xf32> to vector<2x3xf32>
    %315 = arith.addf %313, %314 : vector<2x3xf32>
    %316 = arith.mulf %315, %22 : vector<2x3xf32>
    %cst_118 = arith.constant 3.000000e+00 : f32
    %317 = vector.broadcast %cst_118 : f32 to vector<2x3xf32>
    %318 = arith.divf %316, %317 : vector<2x3xf32>
    %319 = arith.addf %23, %318 : vector<2x3xf32>
    %c0_119 = arith.constant 0 : index
    %c0_120 = arith.constant 0 : index
    %320 = vector.load %arg14[%c0_119, %c0_120] : memref<2x3xf32, #tpu.memory_space<vmem>>, vector<2x3xf32>
    tpu.vector_store %arg14[%c0_119, %c0_120], %319 {strides = array<i32>} : memref<2x3xf32, #tpu.memory_space<vmem>>, vector<2x3xf32>,
    return
  }
}

</mosaic_0001>

<bundles_post_ra>
// kernel: tpu_custom_call.1
= control target key start
LH: loop header
LB: loop body
LE: loop exit
PB: predicated region body
PF: predicated region fallthrough
CT: control target
= control target key end

     0   :  { %19 = vsyncpa [#allocation7], 0  ;;  %s2159_s0 = inlined_call_operand.vmem [shape: s32[2], index: 0, kind: input, shape index: {}]   ;;  %s2160_s1 = inlined_call_operand.vmem [shape: bf16[64,64], index: 1, kind: input, shape index: {}]   ;;  %s2161_s2 = inlined_call_operand.vmem [shape: bf16[64,256], index: 2, kind: input, shape index: {}]   ;;  %s2162_s3 = inlined_call_operand.vmem [shape: bf16[64,256], index: 3, kind: input, shape index: {}]   ;;  %s2163_s4 = inlined_call_operand.vmem [shape: f32[1,256], index: 4, kind: input, shape index: {}]   ;;  %s2164_s5 = inlined_call_operand.vmem [shape: f32[8,80], index: 5, kind: input, shape index: {}]   ;;  %s2165_s6 = inlined_call_operand.vmem [shape: f32[80,64], index: 6, kind: input, shape index: {}]   ;;  %s2166_s7 = inlined_call_operand.vmem [shape: f32[1,64], index: 7, kind: input, shape index: {}]   ;;  %s2167_s8 = inlined_call_operand.vmem [shape: f32[64,6], index: 8, kind: input, shape index: {}]   ;;  %s2168_s9 = inlined_call_operand.vmem [shape: f32[1,6], index: 9, kind: input, shape index: {}]   ;;  %s2169_s10 = inlined_call_operand.vmem [shape: f32[2,38], index: 10, kind: input, shape index: {}]   ;;  %s2170_s11 = inlined_call_operand.vmem [shape: f32[64,9], index: 11, kind: input, shape index: {}]   ;;  %s2171_s12 = inlined_call_operand.vmem [shape: f32[38,9], index: 12, kind: input, shape index: {}]   ;;  %s2172_s13 = inlined_call_operand.vmem [shape: f32[1,9], index: 13, kind: input, shape index: {}]   ;;  %s2173_s14 = inlined_call_operand.hbm [shape: f32[2,3], index: 14, kind: output, shape index: {}]  }
   0x1   :  { %20 = vsyncpa [#allocation6], 0  ;;  %s26_s15 = sshll.u32 %s2159_s0, 4  ;;  %s1623_s16 = smov [#allocation5]   ;;  %s27_s15 = int_to_ptr.vmem [resolvable:$true] %s26_s15 }
   0x2   :  { %29 = dma.vmem_to_smem %s27_s15, 16, %s1623_s16, [#allocation7]  }
   0x3   :  { %1619 = dma.done.wait [#allocation7], 16  }
   0x4   :  { %1620 = vsyncadd [#allocation7], 4294967280 }
   0x5   :  { %60 = sfence }
   0x6   :  { %v241_v0 = vld [vmem:[%s2165_s6 + $0x48] sm:$0xff]  ;;  %v240_v1 = vld [vmem:[%s2165_s6 + $0x40] sm:$0xff]  ;;  %v239_v2 = vld [vmem:[%s2165_s6 + $0x38] sm:$0xff]  ;;  %vm321_vm0 = vcmask 1045504   ;;  %vm246_vm1 = vcmask 654336   ;;  %vm144_vm2 = vcmask 523264  }
   0x7   :  { %256 = vmatpush.msra.mxu2 %v241_v0  ;;  %v278_v3 = vld [vmem:[%s2167_s8 + $0x38] sm:$0xff]  ;;  %v238_v4 = vld [vmem:[%s2165_s6 + $0x30] sm:$0xff]  ;;  %v276_v6 = vld [vmem:[%s2167_s8 + $0x28] sm:$0xff]  ;;  %vm317_vm3 = vcmask 310272   ;;  %s1625_s16 = smov 64   ;;  %s2093_s22 = sld [smem:[#allocation5 + $0x1]] }
   0x8   :  { %294 = vmatpush.msra.mxu3 %v278_v3  ;;  %v277_v5 = vld [vmem:[%s2167_s8 + $0x30] sm:$0xff]  ;;  %v237_v7 = vld [vmem:[%s2165_s6 + $0x28] sm:$0xff]  ;;  %v275_v8 = vld [vmem:[%s2167_s8 + $0x20] sm:$0xff]  ;;  %s1628_s23 = smov 125   ;;  %s1631_s24 = smov [#allocation8]  }
   0x9   :  { %257 = vmatpush.msra.mxu2 %v240_v1  ;;  %v236_v9 = vld [vmem:[%s2165_s6 + $0x20] sm:$0xff]  ;;  %v274_v10 = vld [vmem:[%s2167_s8 + $0x18] sm:$0xff]  ;;  %v273_v12 = vld [vmem:[%s2167_s8 + $0x10] sm:$0xff] }
   0xa   :  { %295 = vmatpush.msra.mxu3 %v277_v5  ;;  %v235_v11 = vld [vmem:[%s2165_s6 + $0x18] sm:$0xff]  ;;  %v234_v13 = vld [vmem:[%s2165_s6 + $0x10] sm:$0xff]  ;;  %v272_v14 = vld [vmem:[%s2167_s8 + $0x8] sm:$0xff] }
   0xb   :  { %258 = vmatpush.msra.mxu2 %v239_v2  ;;  %v233_v15 = vld [vmem:[%s2165_s6 + $0x8] sm:$0xff]  ;;  %v271_v16 = vld [vmem:[%s2167_s8] sm:$0xff]  ;;  %v311_v20 = vld [vmem:[%s2171_s12 + $0x18] sm:$0xff] }
   0xc   :  { %296 = vmatpush.msra.mxu3 %v276_v6  ;;  %v232_v17 = vld [vmem:[%s2165_s6] sm:$0xff]  ;;  %v1459_v21 = vld [vmem:[%s2161_s2 + $0x34] sm:$0xf]  ;;  %v1366_v22 = vld [vmem:[%s2161_s2 + $0x38] sm:$0xf0] }
   0xd   :  { %259 = vmatpush.msra.mxu2 %v238_v4  ;;  %v312_v18 = vld [vmem:[%s2171_s12 + $0x20] sm:$0x3f]  ;;  %v310_v23 = vld [vmem:[%s2171_s12 + $0x10] sm:$0xff]  ;;  %v1369_v24 = vor.u32 %v1459_v21, %v1366_v22  ;;  %v309_v25 = vld [vmem:[%s2171_s12 + $0x8] sm:$0xff]  ;;  %p1185_p1 = scmp.ge.s32.totalorder %s2093_s22, 8 }
   0xe   :  { %297 = vmatpush.msra.mxu3 %v275_v8  ;;  %v231_v19 = vld [vmem:[%s2164_s5] sm:$0xff]  ;;  %v1358_v27 = vld [vmem:[%s2161_s2 + $0x28] sm:$0xf0]  ;;  %v1455_v30 = vld [vmem:[%s2161_s2 + $0x14] sm:$0xf]  ;;  %s1301_s5 = sshll.u32 %s2173_s14, 4  ;;  %s1302_s5 = int_to_ptr.hbm [resolvable:$true] %s1301_s5 }
   0xf   :  { %260 = vmatpush.msra.mxu2 %v237_v7  ;;  %190 = vmatpush.bf16.msra.mxu1 %v1369_v24  ;;  %v1457_v26 = vld [vmem:[%s2161_s2 + $0x24] sm:$0xf]  ;;  %v1350_v31 = vld [vmem:[%s2161_s2 + $0x18] sm:$0xf0]  ;;  %v1467_v33 = vld [vmem:[%s2162_s3 + $0x34] sm:$0xf] }
  0x10   :  { %298 = vmatpush.msra.mxu3 %v274_v10  ;;  %v308_v28 = vld [vmem:[%s2171_s12] sm:$0xff]  ;;  %v1361_v29 = vor.u32 %v1457_v26, %v1358_v27  ;;  %v1353_v32 = vor.u32 %v1455_v30, %v1350_v31  ;;  %v1410_v34 = vld [vmem:[%s2162_s3 + $0x38] sm:$0xf0]  ;;  %v1342_v36 = vld [vmem:[%s2161_s2 + $0x8] sm:$0xf0]  ;;  %s1187_s15 = scalar_select %p1185_p1, 0, %s2093_s22 }
  0x11   :  { %261 = vmatpush.msra.mxu2 %v236_v9  ;;  %v1453_v35 = vld [vmem:[%s2161_s2 + $0x4] sm:$0xf]  ;;  %v1812_v38 = vor.u32 %v1467_v33, %v1410_v34  ;;  %v1402_v40 = vld [vmem:[%s2162_s3 + $0x28] sm:$0xf0]  ;;  %v1463_v43 = vld [vmem:[%s2162_s3 + $0x14] sm:$0xf] }
  0x12   :  { %299 = vmatpush.msra.mxu3 %v273_v12  ;;  %v1345_v37 = vor.u32 %v1453_v35, %v1342_v36  ;;  %v1465_v39 = vld [vmem:[%s2162_s3 + $0x24] sm:$0xf]  ;;  %v1394_v44 = vld [vmem:[%s2162_s3 + $0x18] sm:$0xf0]  ;;  %v1386_v46 = vld [vmem:[%s2162_s3 + $0x8] sm:$0xf0] }
  0x13   :  { %262 = vmatpush.msra.mxu2 %v235_v11  ;;  %191 = vmatpush.bf16.msra.mxu1 %v1361_v29  ;;  %v1449_v41 = vld [vmem:[%s2160_s1] sm:$0xff]  ;;  %v1824_v42 = vor.u32 %v1465_v39, %v1402_v40  ;;  %v1840_v47 = vor.u32 %v1463_v43, %v1394_v44  ;;  %v1408_v48 = vld [vmem:[%s2162_s3 + $0x30] sm:$0xf]  ;;  %v1468_v49 = vld [vmem:[%s2162_s3 + $0x34] sm:$0xf0]  ;;  %s2177_s15 = smov (%p1185_p1, %s1187_s15), 7 }
  0x14   :  { %300 = vmatpush.msra.mxu3 %v272_v14  ;;  %v1461_v45 = vld [vmem:[%s2162_s3 + $0x4] sm:$0xf]  ;;  %v1364_v50 = vld [vmem:[%s2161_s2 + $0x30] sm:$0xf]  ;;  %v1851_v51 = vor.u32 %v1468_v49, %v1408_v48  ;;  %v1460_v52 = vld [vmem:[%s2161_s2 + $0x34] sm:$0xf0] }
  0x15   :  { %263 = vmatpush.msra.mxu2 %v234_v13  ;;  %v1400_v53 = vld [vmem:[%s2162_s3 + $0x20] sm:$0xf]  ;;  %v1466_v54 = vld [vmem:[%s2162_s3 + $0x24] sm:$0xf0]  ;;  %v1365_v55 = vor.u32 %v1460_v52, %v1364_v50  ;;  %v1872_v59 = vor.u32 %v1461_v45, %v1386_v46  ;;  %v1392_v61 = vld [vmem:[%s2162_s3 + $0x10] sm:$0xf] }
  0x16   :  { %301 = vmatpush.msra.mxu3 %v271_v16  ;;  %v1356_v56 = vld [vmem:[%s2161_s2 + $0x20] sm:$0xf]  ;;  %v1458_v57 = vld [vmem:[%s2161_s2 + $0x24] sm:$0xf0]  ;;  %v1870_v58 = vor.u32 %v1466_v54, %v1400_v53  ;;  %v1464_v62 = vld [vmem:[%s2162_s3 + $0x14] sm:$0xf0] }
  0x17   :  { %264 = vmatpush.msra.mxu2 %v233_v15  ;;  %192 = vmatpush.bf16.msra.mxu1 %v1353_v32  ;;  %v1357_v60 = vor.u32 %v1458_v57, %v1356_v56  ;;  %v1348_v63 = vld [vmem:[%s2161_s2 + $0x10] sm:$0xf]  ;;  %v1456_v0 = vld [vmem:[%s2161_s2 + $0x14] sm:$0xf0]  ;;  %v1888_v1 = vor.u32 %v1464_v62, %v1392_v61  ;;  %v1478_v2 = vld [vmem:[%s2166_s7] ss:$0 sm:$0xff] }
  0x18   :  { %1380 = vmatpush.msk.msrb.mxu3 %vm321_vm0, %v312_v18  ;;  %161 = vmatpush.bf16.msra.mxu0 %v1365_v55  ;;  %v1349_v3 = vor.u32 %v1456_v0, %v1348_v63  ;;  %v1384_v4 = vld [vmem:[%s2162_s3] sm:$0xf]  ;;  %v1462_v5 = vld [vmem:[%s2162_s3 + $0x4] sm:$0xf0]  ;;  %v1624_v13 = vmov 0   ;;  %s1630_s12 = smov 3  }
  0x19   :  { %265 = vmatpush.msra.mxu2 %v232_v17  ;;  %v1340_v6 = vld [vmem:[%s2161_s2] sm:$0xf]  ;;  %v1454_v7 = vld [vmem:[%s2161_s2 + $0x4] sm:$0xf0]  ;;  %v1907_v9 = vor.u32 %v1462_v5, %v1384_v4  ;;  %s1186_s2 = scalar_select %p1185_p1, 2, 1 }
  0x1a   :  { %1378 = vmatmul.msk.f32.vlgmr.msra.gmra.mxu2 %vm246_vm1, %v231_v19  ;;  %337 = vmatpush.msrb.mxu3 %v311_v20  ;;  %v1341_v11 = vor.u32 %v1454_v7, %v1340_v6  ;;  %v307_v14 = vld [vmem:[%s2169_s10] sm:$0x3] }
  0x1b   :  { %193 = vmatpush.bf16.msra.mxu1 %v1345_v37  ;;  %405 = vmatpush.bf16.msrb.mxu2 %v1851_v51  ;;  %v78_v17 = vld [vmem:[%s2163_s4] sm:$0x3]  ;;  %s2179_s2 = smov (%p1185_p1, %s1186_s2), 1 }
  0x1c   :  { %338 = vmatpush.msrb.mxu3 %v310_v23  ;;  %162 = vmatpush.bf16.msra.mxu0 %v1357_v60  ;;  %v1953_v19 = vperm.slane %v78_v17, 1  ;;  %v1957_v27 = vperm.slane %v78_v17, 0  ;;  %s1191_s17 = sld [smem:[#allocation5 + %s2179_s2]] }
  0x1e   :  { %339 = vmatpush.msrb.mxu3 %v309_v25  ;;  %1374 = vmatmul.msk.bf16.vlgmr.msra.gmra.mxu1 %vm144_vm2, %v1449_v41 }
  0x1f   :  { %702 = vmatpush.bf16.msrb.mxu1 %v1812_v38  ;;  %406 = vmatpush.bf16.msrb.mxu2 %v1870_v58 }
  0x20   :  { %340 = vmatpush.msrb.mxu3 %v308_v28  ;;  %163 = vmatpush.bf16.msra.mxu0 %v1349_v3 }
  0x22   :  { %p1207_p3 = scmp.gt.s32.totalorder %s1191_s17, %s2177_s15 }
  0x23   :  { %703 = vmatpush.bf16.msrb.mxu1 %v1824_v42  ;;  %407 = vmatpush.bf16.msrb.mxu2 %v1888_v1 }
  0x24   :  { %164 = vmatpush.bf16.msra.mxu0 %v1341_v11  ;;  %s1208_s22 = scalar_select %p1207_p3, 1, 0 }
  0x27   :  { %704 = vmatpush.bf16.msrb.mxu1 %v1840_v47  ;;  %408 = vmatpush.bf16.msrb.mxu2 %v1907_v9 }
  0x28   :  { %689 = vmatpush.bf16.msrb.mxu0 %v1851_v51 }
  0x29   :  { %1370 = vmatmul.msk.bf16.vlgmr.msra.gmra.mxu0 %vm144_vm2, %v1449_v41 }
  0x2a   :  { %409 = vmatmul.bf16.vlgmr.msrb.gmra.mxu2 %v1624_v13 }
  0x2b   :  { %705 = vmatpush.bf16.msrb.mxu1 %v1872_v59  ;;  %499 = vmatpush.bf16.msra.mxu2 %v1851_v51 }
  0x2c   :  { %690 = vmatpush.bf16.msrb.mxu0 %v1870_v58 }
  0x2f   :  { %892 = vmatpush.bf16.msra.mxu1 %v1812_v38  ;;  %500 = vmatpush.bf16.msra.mxu2 %v1870_v58 }
  0x30   :  { %691 = vmatpush.bf16.msrb.mxu0 %v1888_v1 }
  0x33   :  { %893 = vmatpush.bf16.msra.mxu1 %v1824_v42  ;;  %501 = vmatpush.bf16.msra.mxu2 %v1888_v1 }
  0x34   :  { %692 = vmatpush.bf16.msrb.mxu0 %v1907_v9 }
  0x37   :  { %894 = vmatpush.bf16.msra.mxu1 %v1840_v47  ;;  %502 = vmatpush.bf16.msra.mxu2 %v1907_v9 }
  0x38   :  { %879 = vmatpush.bf16.msra.mxu0 %v1851_v51 }
  0x3b   :  { %895 = vmatpush.bf16.msra.mxu1 %v1872_v59  ;;  %594 = vmatpush.bf16.msrb.mxu2 %v1851_v51 }
  0x3c   :  { %880 = vmatpush.bf16.msra.mxu0 %v1870_v58 }
  0x3f   :  { %595 = vmatpush.bf16.msrb.mxu2 %v1870_v58 }
  0x40   :  { %881 = vmatpush.bf16.msra.mxu0 %v1888_v1 }
  0x43   :  { %596 = vmatpush.bf16.msrb.mxu2 %v1888_v1 }
  0x44   :  { %882 = vmatpush.bf16.msra.mxu0 %v1907_v9 }
  0x47   :  { %597 = vmatpush.bf16.msrb.mxu2 %v1907_v9 }
  0x9b   :  { %v195_v21 = vpop.f32.mrf.mxu1 }
  0x9c   :  { %v196_v22 = vadd.f32 %v195_v21, %v1953_v19 }
  0x9d   :  { %v267_v8 = vpop.f32.mrf.mxu2 }
  0x9e   :  { %v268_v10 = vadd.f32 %v1478_v2, %v267_v8 }
  0xa0   :  { %v270_v12 = vmax.f32 %v268_v10, 0.0 }
  0xa2   :  { %1379 = vmatmul.msk.f32.vlgmr.msra.gmra.mxu3 %vm144_vm2, %v270_v12 }
  0xa3   :  { %418 = vmatpush.bf16.msra.mxu3 %v1812_v38  ;;  %v197_v10 = vpop.f32.mrf.mxu1 }
  0xa4   :  { %v198_v11 = vadd.f32 %v197_v10, %v1953_v19 }
  0xa6   :  { %v166_v28 = vpop.f32.mrf.mxu0 }
  0xa7   :  { %419 = vmatpush.bf16.msra.mxu3 %v1824_v42  ;;  %v167_v29 = vadd.f32 %v166_v28, %v1957_v27 }
  0xaa   :  { %1381 = vmatmul.msk.f32.vlgmr.msrb.gmra.mxu3 %vm317_vm3, %v307_v14 }
  0xab   :  { %420 = vmatpush.bf16.msra.mxu3 %v1840_v47 }
  0xad   :  { %v410_v16 = vpop.f32.mrf.mxu2 }
  0xae   :  { %v427_v30 = vadd.f32 %v410_v16, %v167_v29  ;;  %v168_v21 = vpop.f32.mrf.mxu0 }
  0xaf   :  { %421 = vmatpush.bf16.msra.mxu3 %v1872_v59 }
  0xb0   :  { %v1414_v31 = vmul.f32 -1.442695, %v427_v30 }
  0xb2   :  { %422 = vmatmul.bf16.vlgmr.msra.gmra.mxu3 %v1624_v13 }
  0xb3   :  { %512 = vmatpush.bf16.msrb.mxu3 %v1812_v38 }
  0xb5   :  { %v412_v20 = vpop.f32.mrf.mxu2 }
  0xb7   :  { %513 = vmatpush.bf16.msrb.mxu3 %v1824_v42 }
  0xbb   :  { %514 = vmatpush.bf16.msrb.mxu3 %v1840_v47 }
  0xbf   :  { %515 = vmatpush.bf16.msrb.mxu3 %v1872_v59 }
  0xc3   :  { %607 = vmatpush.bf16.msra.mxu3 %v1812_v38 }
  0xc7   :  { %608 = vmatpush.bf16.msra.mxu3 %v1824_v42 }
  0xcb   :  { %609 = vmatpush.bf16.msra.mxu3 %v1840_v47 }
  0xcf   :  { %610 = vmatpush.bf16.msra.mxu3 %v1872_v59 }
 0x125   :  { %v1946_v15 = vpop.f32.mrf.mxu3 }
 0x12d   :  { %v1951_v18 = vpop.f32.mrf.mxu3 }
 0x135   :  { %v423_v23 = vpop.f32.mrf.mxu3 }
 0x136   :  { %v428_v24 = vadd.f32 %v423_v23, %v196_v22  ;;  %v169_v22 = vadd.f32 %v168_v21, %v1957_v27 }
 0x138   :  { %1481 = vtanh.f32 %v428_v24  ;;  %v1415_v54 = vmul.f32 -1.442695, %v428_v24 }
 0x139   :  { %1483 = vpow2.f32 %v1414_v31 }
 0x13d   :  { %v425_v25 = vpop.f32.mrf.mxu3 }
 0x13e   :  { %v1482_v26 = vpop.eup %1481 }
 0x13f   :  { %470 = vrot.lane.b32.xlu0 %v1482_v26, %s1625_s16  ;;  %v1484_v32 = vpop.eup %1483 }
 0x140   :  { %v435_v33 = vadd.f32 1.0, %v1484_v32 }
 0x142   :  { %1485 = vrcp.f32 %v435_v33  ;;  %vm442_vm4 = vweird.f32 %v435_v33  ;;  %v448_v39 = vand.u32 2147483648, %v435_v33  ;;  %v446_v41 = vand.u32 2147483647, %v435_v33 }
 0x144   :  { %v449_v43 = vor.u32 1.1754944e-38, %v448_v39  ;;  %vm447_vm7 = vcmp.eq.f32.partialorder %v446_v41, 8.507059e+37 }
 0x148   :  { %v1486_v34 = vpop.eup %1485 }
 0x149   :  { %v438_v35 = vmul.f32 %v1486_v34, %v435_v33  ;;  %vm443_vm5 = vweird.f32 %v1486_v34 }
 0x14a   :  { %vm444_vm6 = vmor %vm442_vm4, %vm443_vm5 }
 0x14b   :  { %v439_v36 = vsub.f32 1.0, %v438_v35 }
 0x14d   :  { %v440_v37 = vmul.f32 %v1486_v34, %v439_v36 }
 0x14f   :  { %v441_v40 = vadd.f32 %v1486_v34, %v440_v37 }
 0x151   :  { %v445_v44 = vsel %vm444_vm6, %v1486_v34, %v441_v40 }
 0x152   :  { %v450_v46 = vsel %vm447_vm7, %v449_v43, %v445_v44 }
 0x153   :  { %v468_v49 = vmul.f32 0.0, %v450_v46 }
 0x1b1   :  { %v471_v45 = vpop.permute.xlu0 %470 }
 0x1b2   :  { %v473_v48 = vmul.f32 %v471_v45, %v450_v46 }
 0x1b4   :  { %475 = vrot.lane.b32.xlu0 %v473_v48, %s1625_s16 }
 0x226   :  { %v476_v50 = vpop.permute.xlu0 %475 }
 0x227   :  { %v1961_v52 = vadd.f32 %v476_v50, %v468_v49  ;;  %v1450_v50 = vld [vmem:[%s2160_s1 + $0x8] sm:$0xff] }
 0x228   :  { %1375 = vmatmul.msk.bf16.gmra.mxu1 %vm144_vm2, %v1450_v50  ;;  %1371 = vmatmul.msk.bf16.gmra.mxu0 %vm144_vm2, %v1450_v50 }
 0x229   :  { %1487 = vtanh.f32 %v1961_v52 }
 0x22a   :  { %1489 = vpow2.f32 %v1415_v54 }
 0x22f   :  { %v1488_v53 = vpop.eup %1487 }
 0x230   :  { %481 = vrot.lane.b32.xlu1 %v1488_v53, %s1625_s16  ;;  %v1490_v55 = vpop.eup %1489 }
 0x231   :  { %v436_v56 = vadd.f32 1.0, %v1490_v55 }
 0x233   :  { %1491 = vrcp.f32 %v436_v56  ;;  %v463_v0 = vand.u32 2147483648, %v436_v56  ;;  %vm457_vm9 = vweird.f32 %v436_v56  ;;  %v461_v2 = vand.u32 2147483647, %v436_v56 }
 0x235   :  { %v464_v4 = vor.u32 1.1754944e-38, %v463_v0  ;;  %vm462_vm11 = vcmp.eq.f32.partialorder %v461_v2, 8.507059e+37 }
 0x239   :  { %v1492_v57 = vpop.eup %1491 }
 0x23a   :  { %v453_v60 = vmul.f32 %v1492_v57, %v436_v56  ;;  %vm458_vm8 = vweird.f32 %v1492_v57 }
 0x23b   :  { %vm459_vm10 = vmor %vm457_vm9, %vm458_vm8 }
 0x23c   :  { %v454_v61 = vsub.f32 1.0, %v453_v60 }
 0x23e   :  { %v455_v62 = vmul.f32 %v1492_v57, %v454_v61 }
 0x240   :  { %v456_v63 = vadd.f32 %v1492_v57, %v455_v62 }
 0x242   :  { %v460_v3 = vsel %vm459_vm10, %v1492_v57, %v456_v63 }
 0x243   :  { %v465_v5 = vsel %vm462_vm11, %v464_v4, %v460_v3 }
 0x2a2   :  { %v482_v6 = vpop.permute.xlu1 %481 }
 0x2a3   :  { %v484_v7 = vmul.f32 %v482_v6, %v465_v5 }
 0x2a5   :  { %485 = vst.msk [vmem:[#allocation3] sm:$0xff] %vm144_vm2, %v484_v7  ;;  %v491_v8 = vpack.c.bf16 %v484_v7, %v484_v7  ;;  %v200_v4 = vpop.f32.mrf.mxu1 }
 0x2a6   :  { %v201_v5 = vadd.f32 %v200_v4, %v1953_v19 }
 0x2a7   :  { %1416 = vmatmul.msk.bf16.vlgmr.msra.gmra.mxu2 %vm144_vm2, %v491_v8  ;;  %1417 = vmatmul.msk.bf16.vlgmr.msrb.gmra.mxu3 %vm144_vm2, %v491_v8 }
 0x2a8   :  { %797 = vmatpush.bf16.msrb.mxu3 %v1812_v38  ;;  %784 = vmatpush.bf16.msra.mxu2 %v1851_v51 }
 0x2ac   :  { %798 = vmatpush.bf16.msrb.mxu3 %v1824_v42  ;;  %785 = vmatpush.bf16.msra.mxu2 %v1870_v58 }
 0x2b0   :  { %799 = vmatpush.bf16.msrb.mxu3 %v1840_v47  ;;  %786 = vmatpush.bf16.msra.mxu2 %v1888_v1 }
 0x2b4   :  { %800 = vmatpush.bf16.msrb.mxu3 %v1872_v59  ;;  %787 = vmatpush.bf16.msra.mxu2 %v1907_v9 }
 0x32a   :  { %v504_v12 = vpop.f32.mrf.mxu2  ;;  %v517_v13 = vpop.f32.mrf.mxu3 }
 0x32b   :  { %v522_v14 = vadd.f32 %v517_v13, %v198_v11  ;;  %v521_v23 = vadd.f32 %v504_v12, %v169_v22  ;;  %v171_v13 = vpop.f32.mrf.mxu0 }
 0x32d   :  { %1493 = vtanh.f32 %v522_v14  ;;  %v1418_v24 = vmul.f32 -1.442695, %v521_v23  ;;  %v1419_v46 = vmul.f32 -1.442695, %v522_v14  ;;  %v172_v14 = vadd.f32 %v171_v13, %v1957_v27 }
 0x32f   :  { %1495 = vpow2.f32 %v1418_v24 }
 0x332   :  { %v506_v16 = vpop.f32.mrf.mxu2  ;;  %v519_v17 = vpop.f32.mrf.mxu3 }
 0x333   :  { %v1494_v20 = vpop.eup %1493 }
 0x334   :  { %564 = vrot.lane.b32.xlu1 %v1494_v20, %s1625_s16 }
 0x335   :  { %v1496_v25 = vpop.eup %1495 }
 0x336   :  { %v529_v26 = vadd.f32 1.0, %v1496_v25 }
 0x338   :  { %1497 = vrcp.f32 %v529_v26  ;;  %v542_v33 = vand.u32 2147483648, %v529_v26  ;;  %vm536_vm13 = vweird.f32 %v529_v26  ;;  %v540_v34 = vand.u32 2147483647, %v529_v26 }
 0x33a   :  { %v543_v36 = vor.u32 1.1754944e-38, %v542_v33  ;;  %vm541_vm15 = vcmp.eq.f32.partialorder %v540_v34, 8.507059e+37 }
 0x33e   :  { %v1498_v28 = vpop.eup %1497 }
 0x33f   :  { %v532_v29 = vmul.f32 %v1498_v28, %v529_v26  ;;  %vm537_vm12 = vweird.f32 %v1498_v28 }
 0x340   :  { %vm538_vm14 = vmor %vm536_vm13, %vm537_vm12 }
 0x341   :  { %v533_v30 = vsub.f32 1.0, %v532_v29 }
 0x343   :  { %v534_v31 = vmul.f32 %v1498_v28, %v533_v30 }
 0x345   :  { %v535_v32 = vadd.f32 %v1498_v28, %v534_v31 }
 0x347   :  { %v539_v35 = vsel %vm538_vm14, %v1498_v28, %v535_v32 }
 0x348   :  { %v544_v39 = vsel %vm541_vm15, %v543_v36, %v539_v35  ;;  %v1451_v35 = vld [vmem:[%s2160_s1 + $0x10] sm:$0xff]  ;;  %v1452_v36 = vld [vmem:[%s2160_s1 + $0x18] sm:$0xff]  ;;  %s1152_s1 = sld [smem:[#allocation5]] }
 0x349   :  { %v562_v41 = vmul.f32 %v544_v39, %v1961_v52  ;;  %1376 = vmatmul.msk.bf16.gmra.mxu1 %vm144_vm2, %v1451_v35  ;;  %1372 = vmatmul.msk.bf16.gmra.mxu0 %vm144_vm2, %v1451_v35 }
 0x34e   :  { %p1153_p0 = scmp.ge.s32.totalorder %s1152_s1, 8 }
 0x350   :  { %s2113_s28 = scalar_select %p1153_p0, 1, 0 }
 0x351   :  { %s2175_s1 = smov (%p1153_p0, %s1152_s1), 0 }
 0x352   :  { %s1159_s4 = sld [smem:[#allocation5 + %s2113_s28]]  ;;  %s1444_s18 = sshll.u32 %s2175_s1, 3 }
 0x353   :  { %s1161_s19 = scalar_lea.vmem [#allocation3], %s1444_s18 }
 0x358   :  { %p1177_p2 = scmp.gt.s32.totalorder %s1159_s4, %s2175_s1 }
 0x359   :  { %1377 = vmatmul.msk.bf16.gmra.mxu1 %vm144_vm2, %v1452_v36  ;;  %1373 = vmatmul.msk.bf16.gmra.mxu0 %vm144_vm2, %v1452_v36 }
 0x35a   :  { %s1178_s21 = scalar_select %p1177_p2, 1, 0 }
 0x3a6   :  { %v565_v37 = vpop.permute.xlu1 %564 }
 0x3a7   :  { %v567_v40 = vmul.f32 %v565_v37, %v544_v39 }
 0x3a9   :  { %569 = vrot.lane.b32.xlu2 %v567_v40, %s1625_s16 }
 0x403   :  { %v570_v43 = vpop.permute.xlu2 %569 }
 0x404   :  { %v1981_v44 = vadd.f32 %v570_v43, %v562_v41 }
 0x406   :  { %1499 = vtanh.f32 %v1981_v44 }
 0x407   :  { %1501 = vpow2.f32 %v1419_v46 }
 0x40c   :  { %v1500_v45 = vpop.eup %1499 }
 0x40d   :  { %575 = vrot.lane.b32.xlu2 %v1500_v45, %s1625_s16  ;;  %v1502_v48 = vpop.eup %1501 }
 0x40e   :  { %v530_v49 = vadd.f32 1.0, %v1502_v48 }
 0x410   :  { %1503 = vrcp.f32 %v530_v49  ;;  %v557_v57 = vand.u32 2147483648, %v530_v49  ;;  %vm551_vm1 = vweird.f32 %v530_v49  ;;  %v555_v60 = vand.u32 2147483647, %v530_v49 }
 0x412   :  { %v558_v62 = vor.u32 1.1754944e-38, %v557_v57  ;;  %vm556_vm4 = vcmp.eq.f32.partialorder %v555_v60, 8.507059e+37 }
 0x416   :  { %v1504_v52 = vpop.eup %1503 }
 0x417   :  { %v547_v53 = vmul.f32 %v1504_v52, %v530_v49  ;;  %vm552_vm0 = vweird.f32 %v1504_v52 }
 0x418   :  { %vm553_vm3 = vmor %vm551_vm1, %vm552_vm0 }
 0x419   :  { %v548_v54 = vsub.f32 1.0, %v547_v53 }
 0x41b   :  { %v549_v55 = vmul.f32 %v1504_v52, %v548_v54 }
 0x41d   :  { %v550_v56 = vadd.f32 %v1504_v52, %v549_v55 }
 0x41f   :  { %v554_v61 = vsel %vm553_vm3, %v1504_v52, %v550_v56 }
 0x420   :  { %v559_v63 = vsel %vm556_vm4, %v558_v62, %v554_v61 }
 0x467   :  { %v576_v0 = vpop.permute.xlu2 %575 }
 0x468   :  { %v578_v2 = vmul.f32 %v576_v0, %v559_v63  ;;  %v173_v63 = vpop.f32.mrf.mxu0  ;;  %v202_v0 = vpop.f32.mrf.mxu1 }
 0x46a   :  { %580 = vst.msk [vmem:[#allocation3 + $0x8] sm:$0xff] %vm144_vm2, %v578_v2  ;;  %v586_v3 = vpack.c.bf16 %v578_v2, %v578_v2 }
 0x46c   :  { %1420 = vmatmul.msk.bf16.vlgmr.msrb.gmra.mxu2 %vm144_vm2, %v586_v3  ;;  %1421 = vmatmul.msk.bf16.vlgmr.msra.gmra.mxu3 %vm144_vm2, %v586_v3 }
 0x46d   :  { %987 = vmatpush.bf16.msra.mxu3 %v1812_v38  ;;  %974 = vmatpush.bf16.msrb.mxu2 %v1851_v51 }
 0x470   :  { %v2031_v2 = vpop.f32.mrf.mxu0  ;;  %v2033_v3 = vpop.f32.mrf.mxu1 }
 0x471   :  { %988 = vmatpush.bf16.msra.mxu3 %v1824_v42  ;;  %975 = vmatpush.bf16.msrb.mxu2 %v1870_v58 }
 0x475   :  { %989 = vmatpush.bf16.msra.mxu3 %v1840_v47  ;;  %976 = vmatpush.bf16.msrb.mxu2 %v1888_v1 }
 0x479   :  { %990 = vmatpush.bf16.msra.mxu3 %v1872_v59  ;;  %977 = vmatpush.bf16.msrb.mxu2 %v1907_v9 }
 0x4ef   :  { %v599_v6 = vpop.f32.mrf.mxu2  ;;  %v612_v7 = vpop.f32.mrf.mxu3 }
 0x4f0   :  { %v617_v8 = vadd.f32 %v612_v7, %v201_v5  ;;  %v616_v16 = vadd.f32 %v599_v6, %v172_v14 }
 0x4f2   :  { %1505 = vtanh.f32 %v617_v8  ;;  %v1422_v17 = vmul.f32 -1.442695, %v616_v16  ;;  %v1423_v43 = vmul.f32 -1.442695, %v617_v8 }
 0x4f4   :  { %1507 = vpow2.f32 %v1422_v17 }
 0x4f7   :  { %v601_v10 = vpop.f32.mrf.mxu2  ;;  %v614_v11 = vpop.f32.mrf.mxu3 }
 0x4f8   :  { %v1506_v12 = vpop.eup %1505  ;;  %v174_v10 = vadd.f32 %v173_v63, %v1957_v27 }
 0x4f9   :  { %659 = vrot.lane.b32.xlu0 %v1506_v12, %s1625_s16 }
 0x4fa   :  { %v1508_v20 = vpop.eup %1507 }
 0x4fb   :  { %v624_v21 = vadd.f32 1.0, %v1508_v20 }
 0x4fd   :  { %1509 = vrcp.f32 %v624_v21  ;;  %v637_v28 = vand.u32 2147483648, %v624_v21  ;;  %vm631_vm6 = vweird.f32 %v624_v21  ;;  %v635_v29 = vand.u32 2147483647, %v624_v21 }
 0x4ff   :  { %v638_v31 = vor.u32 1.1754944e-38, %v637_v28  ;;  %vm636_vm8 = vcmp.eq.f32.partialorder %v635_v29, 8.507059e+37 }
 0x503   :  { %v1510_v22 = vpop.eup %1509 }
 0x504   :  { %v627_v23 = vmul.f32 %v1510_v22, %v624_v21  ;;  %vm632_vm5 = vweird.f32 %v1510_v22 }
 0x505   :  { %vm633_vm7 = vmor %vm631_vm6, %vm632_vm5 }
 0x506   :  { %v628_v24 = vsub.f32 1.0, %v627_v23 }
 0x508   :  { %v629_v25 = vmul.f32 %v1510_v22, %v628_v24 }
 0x50a   :  { %v630_v26 = vadd.f32 %v1510_v22, %v629_v25 }
 0x50c   :  { %v634_v30 = vsel %vm633_vm7, %v1510_v22, %v630_v26 }
 0x50d   :  { %v639_v33 = vsel %vm636_vm8, %v638_v31, %v634_v30 }
 0x50e   :  { %v657_v37 = vmul.f32 %v639_v33, %v1981_v44 }
 0x56b   :  { %v660_v32 = vpop.permute.xlu0 %659 }
 0x56c   :  { %v662_v34 = vmul.f32 %v660_v32, %v639_v33 }
 0x56e   :  { %664 = vrot.lane.b32.xlu1 %v662_v34, %s1625_s16 }
 0x5e0   :  { %v665_v39 = vpop.permute.xlu1 %664 }
 0x5e1   :  { %v2016_v40 = vadd.f32 %v665_v39, %v657_v37 }
 0x5e3   :  { %1511 = vtanh.f32 %v2016_v40 }
 0x5e4   :  { %1513 = vpow2.f32 %v1423_v43 }
 0x5e9   :  { %v1512_v41 = vpop.eup %1511 }
 0x5ea   :  { %670 = vrot.lane.b32.xlu2 %v1512_v41, %s1625_s16  ;;  %v1514_v45 = vpop.eup %1513 }
 0x5eb   :  { %v625_v46 = vadd.f32 1.0, %v1514_v45 }
 0x5ed   :  { %1515 = vrcp.f32 %v625_v46  ;;  %v652_v44 = vand.u32 2147483648, %v625_v46  ;;  %vm646_vm10 = vweird.f32 %v625_v46  ;;  %v650_v54 = vand.u32 2147483647, %v625_v46 }
 0x5ef   :  { %v653_v56 = vor.u32 1.1754944e-38, %v652_v44  ;;  %vm651_vm12 = vcmp.eq.f32.partialorder %v650_v54, 8.507059e+37 }
 0x5f3   :  { %v1516_v48 = vpop.eup %1515 }
 0x5f4   :  { %v642_v49 = vmul.f32 %v1516_v48, %v625_v46  ;;  %vm647_vm9 = vweird.f32 %v1516_v48 }
 0x5f5   :  { %vm648_vm11 = vmor %vm646_vm10, %vm647_vm9 }
 0x5f6   :  { %v643_v50 = vsub.f32 1.0, %v642_v49 }
 0x5f8   :  { %v644_v52 = vmul.f32 %v1516_v48, %v643_v50 }
 0x5fa   :  { %v645_v53 = vadd.f32 %v1516_v48, %v644_v52 }
 0x5fc   :  { %v649_v55 = vsel %vm648_vm11, %v1516_v48, %v645_v53 }
 0x5fd   :  { %v654_v57 = vsel %vm651_vm12, %v653_v56, %v649_v55  ;;  %v206_v55 = vadd.f32 %v2033_v3, %v1953_v19  ;;  %v177_v56 = vadd.f32 %v2031_v2, %v1957_v27 }
 0x644   :  { %v671_v60 = vpop.permute.xlu2 %670 }
 0x645   :  { %v673_v61 = vmul.f32 %v671_v60, %v654_v57 }
 0x647   :  { %675 = vst.msk [vmem:[#allocation3 + $0x10] sm:$0xff] %vm144_vm2, %v673_v61  ;;  %v681_v62 = vpack.c.bf16 %v673_v61, %v673_v61 }
 0x649   :  { %1424 = vmatmul.msk.bf16.vlgmr.msrb.gmra.mxu0 %vm144_vm2, %v681_v62  ;;  %1425 = vmatmul.msk.bf16.vlgmr.msrb.gmra.mxu1 %vm144_vm2, %v681_v62 }
 0x64a   :  { %1082 = vmatpush.bf16.msrb.mxu1 %v1812_v38  ;;  %1069 = vmatpush.bf16.msrb.mxu0 %v1851_v51  ;;  %v2035_v38 = vpop.f32.mrf.mxu0  ;;  %v2037_v51 = vpop.f32.mrf.mxu1 }
 0x64e   :  { %1083 = vmatpush.bf16.msrb.mxu1 %v1824_v42  ;;  %1070 = vmatpush.bf16.msrb.mxu0 %v1870_v58 }
 0x652   :  { %1084 = vmatpush.bf16.msrb.mxu1 %v1840_v47  ;;  %1071 = vmatpush.bf16.msrb.mxu0 %v1888_v1  ;;  %v2039_v42 = vpop.f32.mrf.mxu0  ;;  %v2041_v58 = vpop.f32.mrf.mxu1 }
 0x656   :  { %1085 = vmatpush.bf16.msrb.mxu1 %v1872_v59  ;;  %1072 = vmatpush.bf16.msrb.mxu0 %v1907_v9  ;;  %v203_v59 = vadd.f32 %v202_v0, %v1953_v19 }
 0x65a   :  { %v2043_v47 = vpop.f32.mrf.mxu0  ;;  %v2045_v1 = vpop.f32.mrf.mxu1 }
 0x6c6   :  { %v694_v9 = vpop.f32.mrf.mxu0  ;;  %v707_v4 = vpop.f32.mrf.mxu1 }
 0x6c7   :  { %v712_v5 = vadd.f32 %v707_v4, %v203_v59  ;;  %v711_v11 = vadd.f32 %v694_v9, %v174_v10 }
 0x6c9   :  { %1517 = vtanh.f32 %v712_v5  ;;  %v1426_v12 = vmul.f32 -1.442695, %v711_v11  ;;  %v1427_v35 = vmul.f32 -1.442695, %v712_v5 }
 0x6cb   :  { %1519 = vpow2.f32 %v1426_v12 }
 0x6ce   :  { %v696_v6 = vpop.f32.mrf.mxu0  ;;  %v709_v7 = vpop.f32.mrf.mxu1 }
 0x6cf   :  { %v1518_v8 = vpop.eup %1517 }
 0x6d0   :  { %754 = vrot.lane.b32.xlu0 %v1518_v8, %s1625_s16 }
 0x6d1   :  { %v1520_v13 = vpop.eup %1519 }
 0x6d2   :  { %v719_v14 = vadd.f32 1.0, %v1520_v13 }
 0x6d4   :  { %1521 = vrcp.f32 %v719_v14  ;;  %v732_v23 = vand.u32 2147483648, %v719_v14  ;;  %vm726_vm14 = vweird.f32 %v719_v14  ;;  %v730_v24 = vand.u32 2147483647, %v719_v14 }
 0x6d6   :  { %v733_v26 = vor.u32 1.1754944e-38, %v732_v23  ;;  %vm731_vm0 = vcmp.eq.f32.partialorder %v730_v24, 8.507059e+37 }
 0x6da   :  { %v1522_v16 = vpop.eup %1521 }
 0x6db   :  { %v722_v17 = vmul.f32 %v1522_v16, %v719_v14  ;;  %vm727_vm13 = vweird.f32 %v1522_v16 }
 0x6dc   :  { %vm728_vm15 = vmor %vm726_vm14, %vm727_vm13 }
 0x6dd   :  { %v723_v20 = vsub.f32 1.0, %v722_v17 }
 0x6df   :  { %v724_v21 = vmul.f32 %v1522_v16, %v723_v20 }
 0x6e1   :  { %v725_v22 = vadd.f32 %v1522_v16, %v724_v21 }
 0x6e3   :  { %v729_v25 = vsel %vm728_vm15, %v1522_v16, %v725_v22 }
 0x6e4   :  { %v734_v29 = vsel %vm731_vm0, %v733_v26, %v729_v25 }
 0x6e5   :  { %v752_v31 = vmul.f32 %v734_v29, %v2016_v40 }
 0x742   :  { %v755_v28 = vpop.permute.xlu0 %754 }
 0x743   :  { %v757_v30 = vmul.f32 %v755_v28, %v734_v29 }
 0x745   :  { %759 = vrot.lane.b32.xlu1 %v757_v30, %s1625_s16 }
 0x7b7   :  { %v760_v32 = vpop.permute.xlu1 %759 }
 0x7b8   :  { %v762_v33 = vadd.f32 %v760_v32, %v752_v31 }
 0x7ba   :  { %1523 = vtanh.f32 %v762_v33 }
 0x7bb   :  { %1525 = vpow2.f32 %v1427_v35 }
 0x7c0   :  { %v1524_v34 = vpop.eup %1523 }
 0x7c1   :  { %765 = vrot.lane.b32.xlu2 %v1524_v34, %s1625_s16  ;;  %v1526_v36 = vpop.eup %1525 }
 0x7c2   :  { %v720_v37 = vadd.f32 1.0, %v1526_v36 }
 0x7c4   :  { %1527 = vrcp.f32 %v720_v37  ;;  %v747_v48 = vand.u32 2147483648, %v720_v37  ;;  %vm741_vm3 = vweird.f32 %v720_v37  ;;  %v745_v40 = vand.u32 2147483647, %v720_v37 }
 0x7c6   :  { %v748_v50 = vor.u32 1.1754944e-38, %v747_v48  ;;  %vm746_vm5 = vcmp.eq.f32.partialorder %v745_v40, 8.507059e+37 }
 0x7ca   :  { %v1528_v39 = vpop.eup %1527 }
 0x7cb   :  { %v737_v41 = vmul.f32 %v1528_v39, %v720_v37  ;;  %vm742_vm1 = vweird.f32 %v1528_v39 }
 0x7cc   :  { %vm743_vm4 = vmor %vm741_vm3, %vm742_vm1 }
 0x7cd   :  { %v738_v43 = vsub.f32 1.0, %v737_v41 }
 0x7cf   :  { %v739_v45 = vmul.f32 %v1528_v39, %v738_v43 }
 0x7d1   :  { %v740_v46 = vadd.f32 %v1528_v39, %v739_v45  ;;  %v208_v45 = vadd.f32 %v2037_v51, %v1953_v19 }
 0x7d3   :  { %v744_v49 = vsel %vm743_vm4, %v1528_v39, %v740_v46  ;;  %v179_v46 = vadd.f32 %v2035_v38, %v1957_v27 }
 0x7d4   :  { %v749_v52 = vsel %vm746_vm5, %v748_v50, %v744_v49 }
 0x81b   :  { %v766_v53 = vpop.permute.xlu2 %765 }
 0x81c   :  { %v768_v44 = vmul.f32 %v766_v53, %v749_v52 }
 0x81e   :  { %770 = vst.msk [vmem:[#allocation3 + $0x18] sm:$0xff] %vm144_vm2, %v768_v44  ;;  %v776_v54 = vpack.c.bf16 %v768_v44, %v768_v44 }
 0x820   :  { %1428 = vmatmul.msk.bf16.vlgmr.msra.gmra.mxu2 %vm144_vm2, %v776_v54  ;;  %1429 = vmatmul.msk.bf16.vlgmr.msrb.gmra.mxu3 %vm144_vm2, %v776_v54 }
 0x8a3   :  { %v789_v57 = vpop.f32.mrf.mxu2  ;;  %v802_v60 = vpop.f32.mrf.mxu3 }
 0x8a4   :  { %v806_v61 = vadd.f32 %v789_v57, %v177_v56  ;;  %v807_v62 = vadd.f32 %v802_v60, %v206_v55 }
 0x8a6   :  { %1529 = vtanh.f32 %v807_v62  ;;  %v1430_v9 = vmul.f32 -1.442695, %v806_v61  ;;  %v1431_v24 = vmul.f32 -1.442695, %v807_v62 }
 0x8a8   :  { %1531 = vpow2.f32 %v1430_v9 }
 0x8ab   :  { %v791_v63 = vpop.f32.mrf.mxu2  ;;  %v804_v0 = vpop.f32.mrf.mxu3 }
 0x8ac   :  { %v1530_v59 = vpop.eup %1529 }
 0x8ad   :  { %849 = vrot.lane.b32.xlu0 %v1530_v59, %s1625_s16 }
 0x8ae   :  { %v1532_v4 = vpop.eup %1531 }
 0x8af   :  { %v814_v5 = vadd.f32 1.0, %v1532_v4 }
 0x8b1   :  { %1533 = vrcp.f32 %v814_v5  ;;  %v827_v10 = vand.u32 2147483648, %v814_v5  ;;  %vm821_vm7 = vweird.f32 %v814_v5  ;;  %v825_v11 = vand.u32 2147483647, %v814_v5 }
 0x8b3   :  { %v828_v13 = vor.u32 1.1754944e-38, %v827_v10  ;;  %vm826_vm9 = vcmp.eq.f32.partialorder %v825_v11, 8.507059e+37 }
 0x8b7   :  { %v1534_v6 = vpop.eup %1533 }
 0x8b8   :  { %v817_v3 = vmul.f32 %v1534_v6, %v814_v5  ;;  %vm822_vm6 = vweird.f32 %v1534_v6 }
 0x8b9   :  { %vm823_vm8 = vmor %vm821_vm7, %vm822_vm6 }
 0x8ba   :  { %v818_v7 = vsub.f32 1.0, %v817_v3 }
 0x8bc   :  { %v819_v8 = vmul.f32 %v1534_v6, %v818_v7 }
 0x8be   :  { %v820_v2 = vadd.f32 %v1534_v6, %v819_v8 }
 0x8c0   :  { %v824_v12 = vsel %vm823_vm8, %v1534_v6, %v820_v2 }
 0x8c1   :  { %v829_v16 = vsel %vm826_vm9, %v828_v13, %v824_v12 }
 0x8c2   :  { %v847_v20 = vmul.f32 %v829_v16, %v762_v33 }
 0x91f   :  { %v850_v14 = vpop.permute.xlu0 %849 }
 0x920   :  { %v852_v17 = vmul.f32 %v850_v14, %v829_v16 }
 0x922   :  { %854 = vrot.lane.b32.xlu1 %v852_v17, %s1625_s16 }
 0x994   :  { %v855_v21 = vpop.permute.xlu1 %854 }
 0x995   :  { %v857_v22 = vadd.f32 %v855_v21, %v847_v20 }
 0x997   :  { %1535 = vtanh.f32 %v857_v22 }
 0x998   :  { %1537 = vpow2.f32 %v1431_v24 }
 0x99d   :  { %v1536_v23 = vpop.eup %1535 }
 0x99e   :  { %860 = vrot.lane.b32.xlu2 %v1536_v23, %s1625_s16  ;;  %v1538_v25 = vpop.eup %1537 }
 0x99f   :  { %v815_v26 = vadd.f32 1.0, %v1538_v25 }
 0x9a1   :  { %1539 = vrcp.f32 %v815_v26  ;;  %v842_v34 = vand.u32 2147483648, %v815_v26  ;;  %vm836_vm11 = vweird.f32 %v815_v26  ;;  %v840_v33 = vand.u32 2147483647, %v815_v26 }
 0x9a3   :  { %v843_v36 = vor.u32 1.1754944e-38, %v842_v34  ;;  %vm841_vm13 = vcmp.eq.f32.partialorder %v840_v33, 8.507059e+37 }
 0x9a7   :  { %v1540_v28 = vpop.eup %1539 }
 0x9a8   :  { %v832_v29 = vmul.f32 %v1540_v28, %v815_v26  ;;  %vm837_vm10 = vweird.f32 %v1540_v28 }
 0x9a9   :  { %vm838_vm12 = vmor %vm836_vm11, %vm837_vm10 }
 0x9aa   :  { %v833_v30 = vsub.f32 1.0, %v832_v29  ;;  %v211_v29 = vadd.f32 %v2041_v58, %v1953_v19 }
 0x9ac   :  { %v834_v31 = vmul.f32 %v1540_v28, %v833_v30  ;;  %v182_v30 = vadd.f32 %v2039_v42, %v1957_v27 }
 0x9ae   :  { %v835_v32 = vadd.f32 %v1540_v28, %v834_v31 }
 0x9b0   :  { %v839_v35 = vsel %vm838_vm12, %v1540_v28, %v835_v32 }
 0x9b1   :  { %v844_v37 = vsel %vm841_vm13, %v843_v36, %v839_v35 }
 0x9f8   :  { %v861_v39 = vpop.permute.xlu2 %860 }
 0x9f9   :  { %v863_v41 = vmul.f32 %v861_v39, %v844_v37 }
 0x9fb   :  { %865 = vst.msk [vmem:[#allocation3 + $0x20] sm:$0xff] %vm144_vm2, %v863_v41  ;;  %v871_v43 = vpack.c.bf16 %v863_v41, %v863_v41 }
 0x9fd   :  { %1432 = vmatmul.msk.bf16.vlgmr.msra.gmra.mxu0 %vm144_vm2, %v871_v43  ;;  %1433 = vmatmul.msk.bf16.vlgmr.msra.gmra.mxu1 %vm144_vm2, %v871_v43 }
 0xa7a   :  { %v884_v48 = vpop.f32.mrf.mxu0  ;;  %v897_v40 = vpop.f32.mrf.mxu1 }
 0xa7b   :  { %v901_v49 = vadd.f32 %v884_v48, %v179_v46  ;;  %v902_v50 = vadd.f32 %v897_v40, %v208_v45 }
 0xa7d   :  { %1541 = vtanh.f32 %v902_v50  ;;  %v1434_v54 = vmul.f32 -1.442695, %v901_v49  ;;  %v1435_v2 = vmul.f32 -1.442695, %v902_v50 }
 0xa7f   :  { %1543 = vpow2.f32 %v1434_v54 }
 0xa82   :  { %v886_v52 = vpop.f32.mrf.mxu0  ;;  %v899_v53 = vpop.f32.mrf.mxu1 }
 0xa83   :  { %v1542_v44 = vpop.eup %1541 }
 0xa84   :  { %944 = vrot.lane.b32.xlu0 %v1542_v44, %s1625_s16 }
 0xa85   :  { %v1544_v55 = vpop.eup %1543 }
 0xa86   :  { %v909_v56 = vadd.f32 1.0, %v1544_v55 }
 0xa88   :  { %1545 = vrcp.f32 %v909_v56  ;;  %v922_v62 = vand.u32 2147483648, %v909_v56  ;;  %vm916_vm15 = vweird.f32 %v909_v56  ;;  %v920_v63 = vand.u32 2147483647, %v909_v56 }
 0xa8a   :  { %v923_v59 = vor.u32 1.1754944e-38, %v922_v62  ;;  %vm921_vm1 = vcmp.eq.f32.partialorder %v920_v63, 8.507059e+37 }
 0xa8e   :  { %v1546_v57 = vpop.eup %1545 }
 0xa8f   :  { %v912_v51 = vmul.f32 %v1546_v57, %v909_v56  ;;  %vm917_vm14 = vweird.f32 %v1546_v57 }
 0xa90   :  { %vm918_vm0 = vmor %vm916_vm15, %vm917_vm14 }
 0xa91   :  { %v913_v60 = vsub.f32 1.0, %v912_v51 }
 0xa93   :  { %v914_v61 = vmul.f32 %v1546_v57, %v913_v60 }
 0xa95   :  { %v915_v38 = vadd.f32 %v1546_v57, %v914_v61 }
 0xa97   :  { %v919_v0 = vsel %vm918_vm0, %v1546_v57, %v915_v38 }
 0xa98   :  { %v924_v4 = vsel %vm921_vm1, %v923_v59, %v919_v0 }
 0xa99   :  { %v942_v6 = vmul.f32 %v924_v4, %v857_v22 }
 0xaf6   :  { %v945_v9 = vpop.permute.xlu0 %944 }
 0xaf7   :  { %v947_v5 = vmul.f32 %v945_v9, %v924_v4 }
 0xaf9   :  { %949 = vrot.lane.b32.xlu1 %v947_v5, %s1625_s16 }
 0xb6b   :  { %v950_v3 = vpop.permute.xlu1 %949 }
 0xb6c   :  { %v952_v7 = vadd.f32 %v950_v3, %v942_v6 }
 0xb6e   :  { %1547 = vtanh.f32 %v952_v7 }
 0xb6f   :  { %1549 = vpow2.f32 %v1435_v2 }
 0xb74   :  { %v1548_v8 = vpop.eup %1547 }
 0xb75   :  { %955 = vrot.lane.b32.xlu2 %v1548_v8, %s1625_s16  ;;  %v1550_v10 = vpop.eup %1549 }
 0xb76   :  { %v910_v11 = vadd.f32 1.0, %v1550_v10 }
 0xb78   :  { %1551 = vrcp.f32 %v910_v11  ;;  %v937_v20 = vand.u32 2147483648, %v910_v11  ;;  %vm931_vm4 = vweird.f32 %v910_v11  ;;  %v935_v21 = vand.u32 2147483647, %v910_v11 }
 0xb7a   :  { %v938_v23 = vor.u32 1.1754944e-38, %v937_v20  ;;  %vm936_vm6 = vcmp.eq.f32.partialorder %v935_v21, 8.507059e+37  ;;  %v184_v21 = vadd.f32 %v2043_v47, %v1957_v27 }
 0xb7e   :  { %v1552_v12 = vpop.eup %1551 }
 0xb7f   :  { %v927_v13 = vmul.f32 %v1552_v12, %v910_v11  ;;  %vm932_vm3 = vweird.f32 %v1552_v12  ;;  %v213_v11 = vadd.f32 %v2045_v1, %v1953_v19 }
 0xb80   :  { %vm933_vm5 = vmor %vm931_vm4, %vm932_vm3 }
 0xb81   :  { %v928_v14 = vsub.f32 1.0, %v927_v13 }
 0xb83   :  { %v929_v16 = vmul.f32 %v1552_v12, %v928_v14 }
 0xb85   :  { %v930_v17 = vadd.f32 %v1552_v12, %v929_v16 }
 0xb87   :  { %v934_v22 = vsel %vm933_vm5, %v1552_v12, %v930_v17 }
 0xb88   :  { %v939_v24 = vsel %vm936_vm6, %v938_v23, %v934_v22 }
 0xbcf   :  { %v956_v25 = vpop.permute.xlu2 %955 }
 0xbd0   :  { %v958_v26 = vmul.f32 %v956_v25, %v939_v24 }
 0xbd2   :  { %960 = vst.msk [vmem:[#allocation3 + $0x28] sm:$0xff] %vm144_vm2, %v958_v26  ;;  %v966_v28 = vpack.c.bf16 %v958_v26, %v958_v26 }
 0xbd4   :  { %1436 = vmatmul.msk.bf16.vlgmr.msrb.gmra.mxu2 %vm144_vm2, %v966_v28  ;;  %1437 = vmatmul.msk.bf16.vlgmr.msra.gmra.mxu3 %vm144_vm2, %v966_v28 }
 0xc57   :  { %v979_v31 = vpop.f32.mrf.mxu2  ;;  %v992_v32 = vpop.f32.mrf.mxu3 }
 0xc58   :  { %v996_v34 = vadd.f32 %v979_v31, %v182_v30  ;;  %v997_v33 = vadd.f32 %v992_v32, %v211_v29 }
 0xc5a   :  { %1553 = vtanh.f32 %v997_v33  ;;  %v1438_v39 = vmul.f32 -1.442695, %v996_v34  ;;  %v1439_v60 = vmul.f32 -1.442695, %v997_v33 }
 0xc5c   :  { %1555 = vpow2.f32 %v1438_v39 }
 0xc5f   :  { %v981_v35 = vpop.f32.mrf.mxu2  ;;  %v994_v36 = vpop.f32.mrf.mxu3 }
 0xc60   :  { %v1554_v37 = vpop.eup %1553 }
 0xc61   :  { %1039 = vrot.lane.b32.xlu0 %v1554_v37, %s1625_s16 }
 0xc62   :  { %v1556_v41 = vpop.eup %1555 }
 0xc63   :  { %v1004_v43 = vadd.f32 1.0, %v1556_v41 }
 0xc65   :  { %1557 = vrcp.f32 %v1004_v43  ;;  %v1017_v40 = vand.u32 2147483648, %v1004_v43  ;;  %vm1011_vm8 = vweird.f32 %v1004_v43  ;;  %v1015_v49 = vand.u32 2147483647, %v1004_v43 }
 0xc67   :  { %v1018_v52 = vor.u32 1.1754944e-38, %v1017_v40  ;;  %vm1016_vm10 = vcmp.eq.f32.partialorder %v1015_v49, 8.507059e+37  ;;  %v1220_v49 = vld [vmem:[%s2170_s11 + $0x30] sm:$0xff] }
 0xc6b   :  { %v1558_v45 = vpop.eup %1557 }
 0xc6c   :  { %v1007_v58 = vmul.f32 %v1558_v45, %v1004_v43  ;;  %vm1012_vm7 = vweird.f32 %v1558_v45 }
 0xc6d   :  { %vm1013_vm9 = vmor %vm1011_vm8, %vm1012_vm7 }
 0xc6e   :  { %v1008_v46 = vsub.f32 1.0, %v1007_v58 }
 0xc70   :  { %v1009_v48 = vmul.f32 %v1558_v45, %v1008_v46 }
 0xc72   :  { %v1010_v42 = vadd.f32 %v1558_v45, %v1009_v48 }
 0xc74   :  { %v1014_v50 = vsel %vm1013_vm9, %v1558_v45, %v1010_v42  ;;  %v1221_v42 = vld [vmem:[%s2170_s11 + $0x38] sm:$0xff] }
 0xc75   :  { %v1019_v44 = vsel %vm1016_vm10, %v1018_v52, %v1014_v50  ;;  %1233 = vmatpush.msra.mxu2 %v1221_v42  ;;  %v1219_v50 = vld [vmem:[%s2170_s11 + $0x28] sm:$0xff]  ;;  %v1218_v52 = vld [vmem:[%s2170_s11 + $0x20] sm:$0xff] }
 0xc76   :  { %v1037_v55 = vmul.f32 %v1019_v44, %v952_v7 }
 0xc77   :  { %1234 = vmatpush.msra.mxu2 %v1220_v49 }
 0xc79   :  { %1235 = vmatpush.msra.mxu2 %v1219_v50  ;;  %v1479_v50 = vld [vmem:[%s2168_s9] ss:$0 sm:$0xff]  ;;  %s1299_s9 = sshll.u32 %s1631_s24, 4  ;;  %s1300_s9 = int_to_ptr.vmem [resolvable:$true] %s1299_s9 }
 0xc7b   :  { %1236 = vmatpush.msra.mxu2 %v1218_v52 }
 0xcd3   :  { %v1040_v53 = vpop.permute.xlu0 %1039 }
 0xcd4   :  { %v1042_v54 = vmul.f32 %v1040_v53, %v1019_v44  ;;  %v1626_v53 = vmov 0.0  }
 0xcd5   :  { %1151 = vst.msk [vmem:[#allocation4] sm:$0xff] %vm144_vm2, %v1626_v53  ;;  %v304_v53 = vadd.f32 %v1479_v50, %v1946_v15 }
 0xcd6   :  { %1044 = vrot.lane.b32.xlu1 %v1042_v54, %s1625_s16  ;;  %v1217_v54 = vld [vmem:[%s2170_s11 + $0x18] sm:$0xff] }
 0xcd7   :  { %1237 = vmatpush.msra.mxu2 %v1217_v54 }
 0xd48   :  { %v1045_v56 = vpop.permute.xlu1 %1044 }
 0xd49   :  { %v1047_v57 = vadd.f32 %v1045_v56, %v1037_v55 }
 0xd4b   :  { %1559 = vtanh.f32 %v1047_v57 }
 0xd4c   :  { %1561 = vpow2.f32 %v1439_v60  ;;  %v1215_v60 = vld [vmem:[%s2170_s11 + $0x8] sm:$0xff] }
 0xd51   :  { %v1560_v51 = vpop.eup %1559 }
 0xd52   :  { %1050 = vrot.lane.b32.xlu2 %v1560_v51, %s1625_s16  ;;  %v1562_v61 = vpop.eup %1561 }
 0xd53   :  { %v1005_v38 = vadd.f32 1.0, %v1562_v61 }
 0xd55   :  { %1563 = vrcp.f32 %v1005_v38  ;;  %v1032_v4 = vand.u32 2147483648, %v1005_v38  ;;  %vm1026_vm12 = vweird.f32 %v1005_v38  ;;  %v1030_v5 = vand.u32 2147483647, %v1005_v38 }
 0xd57   :  { %v1033_v3 = vor.u32 1.1754944e-38, %v1032_v4  ;;  %vm1031_vm14 = vcmp.eq.f32.partialorder %v1030_v5, 8.507059e+37  ;;  %v1165_v4 = vstv %s2113_s28  ;;  %v1195_v5 = vstv %s2179_s2 }
 0xd5b   :  { %v1564_v62 = vpop.eup %1563 }
 0xd5c   :  { %v1022_v63 = vmul.f32 %v1564_v62, %v1005_v38  ;;  %vm1027_vm11 = vweird.f32 %v1564_v62  ;;  %v1214_v38 = vld [vmem:[%s2170_s11] sm:$0xff] }
 0xd5d   :  { %vm1028_vm13 = vmor %vm1026_vm12, %vm1027_vm11  ;;  %vm1182_vm12 = vcmask 516096  }
 0xd5e   :  { %v1023_v0 = vsub.f32 1.0, %v1022_v63  ;;  %v1163_v63 = vlaneseq }
 0xd60   :  { %v1024_v59 = vmul.f32 %v1564_v62, %v1023_v0 }
 0xd62   :  { %v1025_v9 = vadd.f32 %v1564_v62, %v1024_v59 }
 0xd64   :  { %v1029_v6 = vsel %vm1028_vm13, %v1564_v62, %v1025_v9  ;;  %v1164_v9 = vshrl.u32 %v1163_v63, 7 }
 0xd65   :  { %v1034_v7 = vsel %vm1031_vm14, %v1033_v3, %v1029_v6 }
 0xd66   :  { %vm1166_vm8 = vcmp.eq.s32.totalorder %v1164_v9, %v1165_v4  ;;  %vm1196_vm9 = vcmp.eq.s32.totalorder %v1164_v9, %v1195_v5 }
 0xdac   :  { %v1051_v8 = vpop.permute.xlu2 %1050 }
 0xdad   :  { %v1053_v2 = vmul.f32 %v1051_v8, %v1034_v7 }
 0xdaf   :  { %1055 = vst.msk [vmem:[#allocation3 + $0x30] sm:$0xff] %vm144_vm2, %v1053_v2  ;;  %v1061_v10 = vpack.c.bf16 %v1053_v2, %v1053_v2 }
 0xdb1   :  { %1440 = vmatmul.msk.bf16.vlgmr.msrb.gmra.mxu0 %vm144_vm2, %v1061_v10  ;;  %1441 = vmatmul.msk.bf16.vlgmr.msrb.gmra.mxu1 %vm144_vm2, %v1061_v10 }
 0xe2e   :  { %v1074_v12 = vpop.f32.mrf.mxu0  ;;  %v1087_v13 = vpop.f32.mrf.mxu1 }
 0xe2f   :  { %v1092_v14 = vadd.f32 %v1087_v13, %v213_v11  ;;  %v1091_v22 = vadd.f32 %v1074_v12, %v184_v21 }
 0xe31   :  { %1565 = vtanh.f32 %v1092_v14  ;;  %v1442_v23 = vmul.f32 -1.442695, %v1091_v22  ;;  %v1443_v41 = vmul.f32 -1.442695, %v1092_v14  ;;  %v1179_v22 = vstv %s1178_s21 }
 0xe32   :  { %vm1180_vm10 = vcmp.eq.s32.totalorder %v1179_v22, 1 }
 0xe33   :  { %1567 = vpow2.f32 %v1442_v23  ;;  %v1209_v23 = vstv %s1208_s22 }
 0xe34   :  { %vm1210_vm11 = vcmp.eq.s32.totalorder %v1209_v23, 1 }
 0xe36   :  { %v1076_v16 = vpop.f32.mrf.mxu0  ;;  %v1089_v17 = vpop.f32.mrf.mxu1 }
 0xe37   :  { %v1566_v20 = vpop.eup %1565 }
 0xe38   :  { %1134 = vrot.lane.b32.xlu0 %v1566_v20, %s1625_s16 }
 0xe39   :  { %v1568_v24 = vpop.eup %1567 }
 0xe3a   :  { %v1099_v25 = vadd.f32 1.0, %v1568_v24 }
 0xe3c   :  { %1569 = vrcp.f32 %v1099_v25  ;;  %v1112_v30 = vand.u32 2147483648, %v1099_v25  ;;  %vm1106_vm0 = vweird.f32 %v1099_v25  ;;  %v1110_v31 = vand.u32 2147483647, %v1099_v25 }
 0xe3e   :  { %v1113_v34 = vor.u32 1.1754944e-38, %v1112_v30  ;;  %vm1111_vm3 = vcmp.eq.f32.partialorder %v1110_v31, 8.507059e+37  ;;  %v1480_v30 = vld [vmem:[%s2172_s13] ss:$0 sm:$0xff]  ;;  %s1627_s13 = smov 122  }
 0xe3f   :  { %v343_v31 = vadd.f32 %v1480_v30, %v1951_v18 }
 0xe42   :  { %v1570_v26 = vpop.eup %1569 }
 0xe43   :  { %v1102_v19 = vmul.f32 %v1570_v26, %v1099_v25  ;;  %vm1107_vm15 = vweird.f32 %v1570_v26 }
 0xe44   :  { %vm1108_vm1 = vmor %vm1106_vm0, %vm1107_vm15 }
 0xe45   :  { %v1103_v1 = vsub.f32 1.0, %v1102_v19 }
 0xe47   :  { %v1104_v28 = vmul.f32 %v1570_v26, %v1103_v1 }
 0xe49   :  { %v1105_v29 = vadd.f32 %v1570_v26, %v1104_v28 }
 0xe4b   :  { %v1109_v32 = vsel %vm1108_vm1, %v1570_v26, %v1105_v29  ;;  %vm1292_vm1 = vcmask 17408  }
 0xe4c   :  { %v1114_v47 = vsel %vm1111_vm3, %v1113_v34, %v1109_v32 }
 0xe4d   :  { %v1132_v35 = vmul.f32 %v1114_v47, %v1047_v57  ;;  %v1216_v57 = vld [vmem:[%s2170_s11 + $0x10] sm:$0xff]  ;;  %s1446_s11 = sshll.u32 %s2177_s15, 3 }
 0xe4e   :  { %1238 = vmatpush.msra.mxu2 %v1216_v57  ;;  %s1193_s20 = scalar_lea.vmem [#allocation3], %s1446_s11  ;;  %v306_v57 = vmax.f32 %v304_v53, 0.0 }
 0xe50   :  { %1239 = vmatpush.msra.mxu2 %v1215_v60 }
 0xe52   :  { %1240 = vmatpush.msra.mxu2 %v1214_v38 }
 0xeaa   :  { %v1135_v27 = vpop.permute.xlu0 %1134 }
 0xeab   :  { %v1137_v33 = vmul.f32 %v1135_v27, %v1114_v47 }
 0xead   :  { %1139 = vrot.lane.b32.xlu1 %v1137_v33, %s1625_s16 }
 0xf1f   :  { %v1140_v36 = vpop.permute.xlu1 %1139 }
 0xf20   :  { %v1142_v37 = vadd.f32 %v1140_v36, %v1132_v35 }
 0xf22   :  { %1571 = vtanh.f32 %v1142_v37 }
 0xf23   :  { %1573 = vpow2.f32 %v1443_v41 }
 0xf28   :  { %v1572_v39 = vpop.eup %1571 }
 0xf29   :  { %1145 = vrot.lane.b32.xlu2 %v1572_v39, %s1625_s16  ;;  %v1574_v43 = vpop.eup %1573 }
 0xf2a   :  { %v1100_v45 = vadd.f32 1.0, %v1574_v43 }
 0xf2c   :  { %1575 = vrcp.f32 %v1100_v45  ;;  %v1127_v55 = vand.u32 2147483648, %v1100_v45  ;;  %vm1121_vm5 = vweird.f32 %v1100_v45  ;;  %v1125_v56 = vand.u32 2147483647, %v1100_v45 }
 0xf2e   :  { %v1128_v61 = vor.u32 1.1754944e-38, %v1127_v55  ;;  %vm1126_vm7 = vcmp.eq.f32.partialorder %v1125_v56, 8.507059e+37 }
 0xf32   :  { %v1576_v58 = vpop.eup %1575 }
 0xf33   :  { %v1117_v46 = vmul.f32 %v1576_v58, %v1100_v45  ;;  %vm1122_vm4 = vweird.f32 %v1576_v58 }
 0xf34   :  { %vm1123_vm6 = vmor %vm1121_vm5, %vm1122_vm4 }
 0xf35   :  { %v1118_v48 = vsub.f32 1.0, %v1117_v46 }
 0xf37   :  { %v1119_v40 = vmul.f32 %v1576_v58, %v1118_v48  ;;  %v1629_v48 = vmov 3.0  }
 0xf39   :  { %v1120_v44 = vadd.f32 %v1576_v58, %v1119_v40 }
 0xf3b   :  { %v1124_v51 = vsel %vm1123_vm6, %v1576_v58, %v1120_v44 }
 0xf3c   :  { %v1129_v62 = vsel %vm1126_vm7, %v1128_v61, %v1124_v51 }
 0xf83   :  { %v1146_v0 = vpop.permute.xlu2 %1145 }
 0xf84   :  { %v1148_v59 = vmul.f32 %v1146_v0, %v1129_v62 }
 0xf86   :  { %1150 = vst.msk [vmem:[#allocation3 + $0x38] sm:$0xff] %vm144_vm2, %v1148_v59 }
 0xf8d   :  { %v1162_v6 = vld [vmem:[%s1161_s19] sm:$0xff] }
 0xf8e   :  { %v1194_v3 = vld [vmem:[%s1193_s20] sm:$0xff]  ;;  %v1169_v7 = vsel %vm1166_vm8, %v1162_v6, 0.0 }
 0xf8f   :  { %v1199_v8 = vsel %vm1196_vm9, %v1194_v3, 0.0  ;;  %v1170_v2 = vsel %vm144_vm2, %v1169_v7, 0.0 }
 0xf90   :  { %v1200_v10 = vsel %vm144_vm2, %v1199_v8, 0.0  ;;  %v1171_v11 = vrot.slane %v1170_v2, 4 }
 0xf91   :  { %v1201_v12 = vrot.slane %v1200_v10, 4 }
 0xf92   :  { %v1172_v13 = vadd.f32 %v1171_v11, %v1170_v2 }
 0xf93   :  { %v1202_v14 = vadd.f32 %v1201_v12, %v1200_v10 }
 0xf94   :  { %v1173_v16 = vrot.slane %v1172_v13, 2 }
 0xf95   :  { %v1203_v17 = vrot.slane %v1202_v14, 2 }
 0xf96   :  { %v1174_v20 = vadd.f32 %v1173_v16, %v1172_v13 }
 0xf97   :  { %v1204_v21 = vadd.f32 %v1203_v17, %v1202_v14 }
 0xf98   :  { %v1175_v24 = vrot.slane %v1174_v20, 1 }
 0xf99   :  { %v1205_v25 = vrot.slane %v1204_v21, 1 }
 0xf9a   :  { %v1176_v26 = vadd.f32 %v1175_v24, %v1174_v20 }
 0xf9b   :  { %v1206_v19 = vadd.f32 %v1205_v25, %v1204_v21 }
 0xf9c   :  { %v1181_v1 = vsel %vm1180_vm10, %v1176_v26, 0.0 }
 0xf9d   :  { %v1211_v28 = vsel %vm1210_vm11, %v1206_v19, 0.0  ;;  %1183 = vst.msk [vmem:[#allocation4] sm:$0x1] %vm1182_vm12, %v1181_v1 }
 0xf9e   :  { %1212 = vst.msk [vmem:[#allocation4 + $0x1] sm:$0x1] %vm1182_vm12, %v1211_v28 }
 0xfa5   :  { %v1213_v29 = vld [vmem:[#allocation4] sm:$0xff] }
 0xfa6   :  { %1447 = vmatmul.msk.f32.vlgmr.msra.gmra.mxu2 %vm144_vm2, %v1213_v29 }
0x1029   :  { %v1242_v32 = vpop.f32.mrf.mxu2 }
0x102a   :  { %v1245_v34 = vadd.f32 %v1242_v32, %v343_v31 }
0x102c   :  { %v1448_v27 = vmul.f32 -1.442695, %v1245_v34 }
0x102e   :  { %1577 = vpow2.f32 %v1448_v27 }
0x1034   :  { %v1578_v47 = vpop.eup %1577 }
0x1035   :  { %v1249_v33 = vadd.f32 1.0, %v1578_v47 }
0x1037   :  { %1579 = vrcp.f32 %v1249_v33  ;;  %v1261_v39 = vand.u32 2147483648, %v1249_v33  ;;  %v1259_v43 = vand.u32 2147483647, %v1249_v33  ;;  %vm1255_vm2 = vweird.f32 %v1249_v33 }
0x1038   :  { %1581 = vrcp.f32 %v1629_v48 }
0x1039   :  { %v1262_v58 = vor.u32 1.1754944e-38, %v1261_v39  ;;  %vm1260_vm15 = vcmp.eq.f32.partialorder %v1259_v43, 8.507059e+37 }
0x103d   :  { %v1580_v35 = vpop.eup %1579 }
0x103e   :  { %v1251_v36 = vmul.f32 %v1580_v35, %v1249_v33  ;;  %vm1256_vm13 = vweird.f32 %v1580_v35  ;;  %v1582_v42 = vpop.eup %1581 }
0x103f   :  { %vm1257_vm14 = vmor %vm1255_vm2, %vm1256_vm13  ;;  %v1276_v40 = vmul.f32 3.0, %v1582_v42  ;;  %vm1280_vm0 = vweird.f32 %v1582_v42 }
0x1040   :  { %v1252_v37 = vsub.f32 1.0, %v1251_v36 }
0x1041   :  { %v1277_v49 = vsub.f32 1.0, %v1276_v40 }
0x1042   :  { %v1253_v41 = vmul.f32 %v1580_v35, %v1252_v37 }
0x1043   :  { %v1278_v52 = vmul.f32 %v1582_v42, %v1277_v49 }
0x1044   :  { %v1254_v45 = vadd.f32 %v1580_v35, %v1253_v41 }
0x1045   :  { %v1279_v54 = vadd.f32 %v1582_v42, %v1278_v52 }
0x1046   :  { %v1258_v46 = vsel %vm1257_vm14, %v1580_v35, %v1254_v45 }
0x1047   :  { %v1263_v18 = vsel %vm1260_vm15, %v1262_v58, %v1258_v46  ;;  %v1281_v60 = vsel %vm1280_vm0, %v1582_v42, %v1279_v54 }
0x1048   :  { %1270 = vrot.lane.b32.xlu1 %v1263_v18, %s1627_s13  ;;  %1266 = vrot.lane.b32.xlu0 %v1263_v18, %s1628_s23 }
0x10ba   :  { %v1267_v44 = vpop.permute.xlu0 %1266  ;;  %v1271_v56 = vpop.permute.xlu1 %1270 }
0x10bb   :  { %v1269_v55 = vadd.f32 %v1267_v44, %v1263_v18 }
0x10bd   :  { %v1273_v51 = vadd.f32 %v1271_v56, %v1269_v55 }
0x10bf   :  { %v1274_v61 = vmul.f32 %v1273_v51, %v306_v57 }
0x10c1   :  { %v1282_v38 = vmul.f32 %v1281_v60, %v1274_v61 }
0x10c3   :  { %1284 = vrot.lane.b32.xlu2 %v1282_v38, %s1630_s12 }
0x111d   :  { %v1285_v62 = vpop.permute.xlu2 %1284 }
0x111e   :  { %v1287_v63 = vadd.f32 %v1285_v62, %v306_v57 }
0x1120   :  { %1289 = vrot.lane.b32.xlu0 %v1287_v63, %s1628_s23 }
0x1192   :  { %v1290_v15 = vpop.permute.xlu0 %1289 }
0x1193   :  { %1293 = vst.msk [vmem:[#allocation8] sm:$0x3] %vm1292_vm1, %v1290_v15 }
0x1194   :  { %1304 = dma.vmem_to_hbm [thread:$0]  %s1300_s9, 32, %s1302_s5, [#allocation6]  }
0x1195   :  { %1621 = dma.done.wait [#allocation6], 32  }
0x1196   :  { %1622 = vsyncadd [#allocation6], 4294967264 }
0x1197   :  { %1309 = vsyncpa [#allocation6], 1 }
0x1198   :  { %1310 = vsyncpa [#allocation7], 1 }

</bundles_post_ra>
